<compile_context>
chip_gen: v6e
topology: v6e:2x2x1
jax: 0.10.0
libtpu: 0.0.40
codegen_flags: <defaults>
</compile_context>

<pallas_src>
import jax
import jax.numpy as jnp
from jax.experimental import pallas as pl
from jax.experimental.pallas import tpu as pltpu

HIDDEN = 512
LEAKY_SLOPE = 0.01        # F.leaky_relu default negative_slope
BATCH_TILE = 512          # max batch rows per grid step
SPLIT_THRESHOLD = 256     # above this padded batch, force >= 2 grid steps


def _round_up(x, m):
    return ((x + m - 1) // m) * m


def _leaky_relu(v):
    # vmul + vmax (cheaper than jnp.where's vcmp + vselect).
    return jnp.maximum(v, LEAKY_SLOPE * v)


def critic_kernel(x_ref,
                  w1_ref, b1_ref,
                  w2_ref, b2_ref,
                  w3_ref, b3_ref,
                  w4_ref, b4_ref,
                  o_ref):
    """One batch tile of the 4-layer MLP: 3 MXU matmuls + VPU/XLU final layer."""
    # Layer 1: single K=in_dim MXU pass (concat was done in the wrapper).
    h = jnp.dot(x_ref[...], w1_ref[...], preferred_element_type=jnp.float32)
    h = _leaky_relu(h + b1_ref[...])

    # Layers 2-3: bf16 operands into the MXU, f32 accumulate + epilogue.
    h = _leaky_relu(
        jnp.dot(h.astype(jnp.bfloat16), w2_ref[...],
                preferred_element_type=jnp.float32) + b2_ref[...])
    h = _leaky_relu(
        jnp.dot(h.astype(jnp.bfloat16), w3_ref[...],
                preferred_element_type=jnp.float32) + b3_ref[...])

    # Layer 4 (512 -> 1): elementwise mul + cross-lane reduce instead of an
    # almost-empty N=1 MXU pass (MXU is the binding unit; VPU/XLU have slack).
    q = jnp.sum(h * w4_ref[...], axis=-1, keepdims=True) + b4_ref[...]
    o_ref[...] = q.astype(o_ref.dtype)


@jax.jit
def critic_forward(state, action, kparams):
    # PyTorch forward: cat(state, action, dim=1) -> 4 Linear + leaky_relu x3.
    # x.squeeze() is a no-op for batch > 1; output kept 2-D (B, 1).
    B, state_dim = state.shape
    action_dim = action.shape[1]
    in_dim = state_dim + action_dim

    # Concat in the wrapper (free: we already materialize bf16 copies here).
    x = jnp.concatenate([state, action], axis=1).astype(jnp.bfloat16)

    # Batch tile selection:
    #  * tiny batches: one tile, rounded up to 16 rows (bf16 sublane packing)
    #  * mid batches: split into >= 2 tiles so v7x megacore gets both TCs
    #  * large batches: cap at BATCH_TILE (512) to amortize per-step overhead
    b16 = _round_up(max(B, 1), 16)
    if b16 <= SPLIT_THRESHOLD:
        tb = max(16, b16)
    else:
        tb = min(BATCH_TILE, _round_up(pl.cdiv(b16, 2), 16))
    b_pad = _round_up(B, tb)

    if b_pad != B:
        x = jnp.pad(x, ((0, b_pad - B), (0, 0)))

    grid = (b_pad // tb,)

    def moving(feat):
        return pl.BlockSpec((tb, feat), lambda i: (i, 0))

    def resident(shape):
        # Same block index every grid step -> stays VMEM-resident, no re-DMA.
        return pl.BlockSpec(shape, lambda i: (0, 0))

    in_specs = [
        moving(in_dim),                       # concatenated input tile (bf16)
        resident((in_dim, HIDDEN)),           # w1, bf16
        resident((1, HIDDEN)),                # b1, f32
        resident((HIDDEN, HIDDEN)),           # w2, bf16
        resident((1, HIDDEN)),                # b2, f32
        resident((HIDDEN, HIDDEN)),           # w3, bf16
        resident((1, HIDDEN)),                # b3, f32
        resident((1, HIDDEN)),                # w4 row, f32
        resident((1, 1)),                     # b4, f32
    ]
    out_spec = pl.BlockSpec((tb, 1), lambda i: (i, 0))

    flops = 2 * b_pad * (in_dim * HIDDEN + 2 * HIDDEN * HIDDEN + HIDDEN)
    bytes_accessed = (
        b_pad * in_dim * 2                                   # bf16 activations in
        + (in_dim * HIDDEN + 2 * HIDDEN * HIDDEN) * 2        # bf16 weights
        + (3 * HIDDEN + HIDDEN + 1) * 4                      # f32 biases + w4 row
        + b_pad * 4)                                         # f32 output

    q = pl.pallas_call(
        critic_kernel,
        grid=grid,
        out_shape=jax.ShapeDtypeStruct((b_pad, 1), jnp.float32),
        in_specs=in_specs,
        out_specs=out_spec,
        compiler_params=pltpu.CompilerParams(
            dimension_semantics=("parallel",)),
        cost_estimate=pl.CostEstimate(
            flops=flops, transcendentals=0, bytes_accessed=bytes_accessed),
    )(x,
      kparams["w1"], kparams["b1"],
      kparams["w2"], kparams["b2"],
      kparams["w3"], kparams["b3"],
      kparams["w4_row"], kparams["b4"])

    return q[:B]


# ---------------------------------------------------------------------------
# Parameter construction (matches the PyTorch module's init) + references.
# ---------------------------------------------------------------------------

def xavier_uniform(key, fan_in, fan_out, dtype=jnp.float32):
    # torch.nn.init.xavier_uniform_ (gain=1); symmetric bound in fan_in/fan_out.
    bound = (6.0 / (fan_in + fan_out)) ** 0.5
    return jax.random.uniform(key, (fan_in, fan_out), dtype,
                              minval=-bound, maxval=bound)


def init_params(key, state_dim, action_dim):
    in_dim = state_dim + action_dim
    k1, k2, k3, k4 = jax.random.split(key, 4)
    return {
        "w1": xavier_uniform(k1, in_dim, HIDDEN),
        "b1": jnp.full((1, HIDDEN), 0.01, jnp.float32),
        "w2": xavier_uniform(k2, HIDDEN, HIDDEN),
        "b2": jnp.full((1, HIDDEN), 0.01, jnp.float32),
        "w3": xavier_uniform(k3, HIDDEN, HIDDEN),
        "b3": jnp.full((1, HIDDEN), 0.01, jnp.float32),
        "w4": xavier_uniform(k4, HIDDEN, 1),
        "b4": jnp.full((1, 1), 0.01, jnp.float32),
    }


def prepare_kernel_params(params):
    """One-time conversion to kernel layout: bf16 matmul weights, w4 as f32 row."""
    return {
        "w1": params["w1"].astype(jnp.bfloat16),   # (in_dim, 512)
        "b1": params["b1"],
        "w2": params["w2"].astype(jnp.bfloat16),   # (512, 512)
        "b2": params["b2"],
        "w3": params["w3"].astype(jnp.bfloat16),   # (512, 512)
        "b3": params["b3"],
        "w4_row": params["w4"].T,                  # (1, 512) f32
        "b4": params["b4"],                        # (1, 1)  f32
    }


def reference_f32(state, action, params):
    x = jnp.concatenate([state, action], axis=1).astype(jnp.float32)
    h = _leaky_relu(x @ params["w1"] + params["b1"])
    h = _leaky_relu(h @ params["w2"] + params["b2"])
    h = _leaky_relu(h @ params["w3"] + params["b3"])
    return h @ params["w4"] + params["b4"]


def reference_bf16(state, action, params):
    """Pure-JAX mirror of the kernel's bf16-operand / f32-accumulate path."""
    # TODO(synk): bf16 operands are an intentional precision tradeoff vs the
    # f32 PyTorch critic; use an f32 variant if exact target-network parity
    # is required.
    bf = jnp.bfloat16
    x = jnp.concatenate([state, action], axis=1).astype(bf)
    h = jnp.dot(x, params["w1"].astype(bf), preferred_element_type=jnp.float32)
    h = _leaky_relu(h + params["b1"])
    h = _leaky_relu(jnp.dot(h.astype(bf), params["w2"].astype(bf),
                            preferred_element_type=jnp.float32) + params["b2"])
    h = _leaky_relu(jnp.dot(h.astype(bf), params["w3"].astype(bf),
                            preferred_element_type=jnp.float32) + params["b3"])
    return h @ params["w4"] + params["b4"]


if __name__ == "__main__":
    key = jax.random.PRNGKey(0)
    k_state, k_action, k_params, k_mid, k_big = jax.random.split(key, 5)

    batch, state_dim, action_dim = 2, 24, 8
    state = jax.random.normal(k_state, (batch, state_dim), jnp.float32)
    action = jax.random.normal(k_action, (batch, action_dim), jnp.float32)
    params = init_params(k_params, state_dim, action_dim)
    kparams = prepare_kernel_params(params)

    # Tiny batch: pads to one 16-row tile, grid=(1,).
    q = jax.block_until_ready(critic_forward(state, action, kparams))
    assert q.shape == (batch, 1), q.shape
    q_bf = reference_bf16(state, action, params)
    q_fp = reference_f32(state, action, params)
    assert jnp.allclose(q, q_bf, atol=1e-2, rtol=1e-2), (q, q_bf)
    assert jnp.allclose(q, q_fp, atol=5e-2, rtol=5e-2), (q, q_fp)

    # Mid batch (300): forced split -> grid=(2,) so megacore (v7x) is exercised.
    km_s, km_a = jax.random.split(k_mid)
    mid_b = 300
    mid_state = jax.random.normal(km_s, (mid_b, state_dim), jnp.float32)
    mid_action = jax.random.normal(km_a, (mid_b, action_dim), jnp.float32)
    q_mid = jax.block_until_ready(critic_forward(mid_state, mid_action, kparams))
    assert q_mid.shape == (mid_b, 1), q_mid.shape
    assert jnp.allclose(q_mid, reference_bf16(mid_state, mid_action, params),
                        atol=1e-2, rtol=1e-2)

    # Large batch (1100): hits the capped tb=512 path, grid=(3,), weight residency.
    kb_s, kb_a = jax.random.split(k_big)
    big_b = 1100
    big_state = jax.random.normal(kb_s, (big_b, state_dim), jnp.float32)
    big_action = jax.random.normal(kb_a, (big_b, action_dim), jnp.float32)
    q_big = jax.block_until_ready(critic_forward(big_state, big_action, kparams))
    assert q_big.shape == (big_b, 1), q_big.shape
    assert jnp.allclose(q_big, reference_bf16(big_state, big_action, params),
                        atol=1e-2, rtol=1e-2)

    print("KERNEL_OK")
</pallas_src>

<mosaic_0001>
module attributes {stable_mosaic.version = 11 : i64} {
  func.func @critic_kernel(%arg0: i32, %arg1: memref<16x32xbf16, #tpu.memory_space<vmem>>, %arg2: memref<32x512xbf16, #tpu.memory_space<vmem>>, %arg3: memref<1x512xf32, #tpu.memory_space<vmem>>, %arg4: memref<512x512xbf16, #tpu.memory_space<vmem>>, %arg5: memref<1x512xf32, #tpu.memory_space<vmem>>, %arg6: memref<512x512xbf16, #tpu.memory_space<vmem>>, %arg7: memref<1x512xf32, #tpu.memory_space<vmem>>, %arg8: memref<1x512xf32, #tpu.memory_space<vmem>>, %arg9: memref<1x1xf32, #tpu.memory_space<vmem>>, %arg10: memref<16x1xf32, #tpu.memory_space<vmem>>) attributes {dimension_semantics = [#tpu.dimension_semantics<parallel>], iteration_bounds = array<i64: 1>, scalar_prefetch = 0 : i64, scratch_operands = 0 : i64, tpu.core_type = #tpu.core_type<tc>, window_params = [{transform_indices = @transform_0, window_bounds = array<i64: 16, 32>}, {pipeline_mode = #tpu.pipeline_mode<synchronous>, transform_indices = @transform_1, window_bounds = array<i64: 32, 512>}, {pipeline_mode = #tpu.pipeline_mode<synchronous>, transform_indices = @transform_2, window_bounds = array<i64: 1, 512>}, {pipeline_mode = #tpu.pipeline_mode<synchronous>, transform_indices = @transform_3, window_bounds = array<i64: 512, 512>}, {pipeline_mode = #tpu.pipeline_mode<synchronous>, transform_indices = @transform_4, window_bounds = array<i64: 1, 512>}, {pipeline_mode = #tpu.pipeline_mode<synchronous>, transform_indices = @transform_5, window_bounds = array<i64: 512, 512>}, {pipeline_mode = #tpu.pipeline_mode<synchronous>, transform_indices = @transform_6, window_bounds = array<i64: 1, 512>}, {pipeline_mode = #tpu.pipeline_mode<synchronous>, transform_indices = @transform_7, window_bounds = array<i64: 1, 512>}, {pipeline_mode = #tpu.pipeline_mode<synchronous>, transform_indices = @transform_8, window_bounds = array<i64: 1, 1>}, {transform_indices = @transform_9, window_bounds = array<i64: 16, 1>}]} {
    %c0 = arith.constant 0 : index
    %c0_0 = arith.constant 0 : index
    %0 = vector.load %arg1[%c0, %c0_0] : memref<16x32xbf16, #tpu.memory_space<vmem>>, vector<16x32xbf16>
    %c0_1 = arith.constant 0 : index
    %c0_2 = arith.constant 0 : index
    %1 = vector.load %arg2[%c0_1, %c0_2] : memref<32x512xbf16, #tpu.memory_space<vmem>>, vector<32x512xbf16>
    %cst = arith.constant dense<0.000000e+00> : vector<16x512xf32>
    %2 = tpu.matmul %0, %1, %cst {dimension_numbers = #tpu.dot_dimension_numbers<[1], [0], [0], [1], [0, 0, 1, 1], [], []>} : vector<16x32xbf16>, vector<32x512xbf16>, vector<16x512xf32> -> vector<16x512xf32>
    %c0_3 = arith.constant 0 : index
    %c0_4 = arith.constant 0 : index
    %3 = vector.load %arg3[%c0_3, %c0_4] : memref<1x512xf32, #tpu.memory_space<vmem>>, vector<1x512xf32>
    %4 = vector.broadcast %3 : vector<1x512xf32> to vector<16x512xf32>
    %5 = arith.addf %2, %4 : vector<16x512xf32>
    %cst_5 = arith.constant 0.00999999977 : f32
    %6 = vector.broadcast %cst_5 : f32 to vector<16x512xf32>
    %7 = arith.mulf %6, %5 : vector<16x512xf32>
    %8 = arith.maximumf %5, %7 : vector<16x512xf32>
    %9 = arith.truncf %8 : vector<16x512xf32> to vector<16x512xbf16>
    %c0_6 = arith.constant 0 : index
    %c0_7 = arith.constant 0 : index
    %10 = vector.load %arg4[%c0_6, %c0_7] : memref<512x512xbf16, #tpu.memory_space<vmem>>, vector<512x512xbf16>
    %cst_8 = arith.constant dense<0.000000e+00> : vector<16x512xf32>
    %11 = tpu.matmul %9, %10, %cst_8 {dimension_numbers = #tpu.dot_dimension_numbers<[1], [0], [0], [1], [0, 0, 1, 1], [], []>} : vector<16x512xbf16>, vector<512x512xbf16>, vector<16x512xf32> -> vector<16x512xf32>
    %c0_9 = arith.constant 0 : index
    %c0_10 = arith.constant 0 : index
    %12 = vector.load %arg5[%c0_9, %c0_10] : memref<1x512xf32, #tpu.memory_space<vmem>>, vector<1x512xf32>
    %13 = vector.broadcast %12 : vector<1x512xf32> to vector<16x512xf32>
    %14 = arith.addf %11, %13 : vector<16x512xf32>
    %cst_11 = arith.constant 0.00999999977 : f32
    %15 = vector.broadcast %cst_11 : f32 to vector<16x512xf32>
    %16 = arith.mulf %15, %14 : vector<16x512xf32>
    %17 = arith.maximumf %14, %16 : vector<16x512xf32>
    %18 = arith.truncf %17 : vector<16x512xf32> to vector<16x512xbf16>
    %c0_12 = arith.constant 0 : index
    %c0_13 = arith.constant 0 : index
    %19 = vector.load %arg6[%c0_12, %c0_13] : memref<512x512xbf16, #tpu.memory_space<vmem>>, vector<512x512xbf16>
    %cst_14 = arith.constant dense<0.000000e+00> : vector<16x512xf32>
    %20 = tpu.matmul %18, %19, %cst_14 {dimension_numbers = #tpu.dot_dimension_numbers<[1], [0], [0], [1], [0, 0, 1, 1], [], []>} : vector<16x512xbf16>, vector<512x512xbf16>, vector<16x512xf32> -> vector<16x512xf32>
    %c0_15 = arith.constant 0 : index
    %c0_16 = arith.constant 0 : index
    %21 = vector.load %arg7[%c0_15, %c0_16] : memref<1x512xf32, #tpu.memory_space<vmem>>, vector<1x512xf32>
    %22 = vector.broadcast %21 : vector<1x512xf32> to vector<16x512xf32>
    %23 = arith.addf %20, %22 : vector<16x512xf32>
    %cst_17 = arith.constant 0.00999999977 : f32
    %24 = vector.broadcast %cst_17 : f32 to vector<16x512xf32>
    %25 = arith.mulf %24, %23 : vector<16x512xf32>
    %26 = arith.maximumf %23, %25 : vector<16x512xf32>
    %c0_18 = arith.constant 0 : index
    %c0_19 = arith.constant 0 : index
    %27 = vector.load %arg8[%c0_18, %c0_19] : memref<1x512xf32, #tpu.memory_space<vmem>>, vector<1x512xf32>
    %28 = vector.broadcast %27 : vector<1x512xf32> to vector<16x512xf32>
    %29 = arith.mulf %26, %28 : vector<16x512xf32>
    %cst_20 = arith.constant dense<0.000000e+00> : vector<16xf32>
    %30 = vector.multi_reduction <add>, %29, %cst_20 [1] : vector<16x512xf32> to vector<16xf32>
    %31 = vector.shape_cast %30 : vector<16xf32> to vector<16x1xf32>
    %c0_21 = arith.constant 0 : index
    %c0_22 = arith.constant 0 : index
    %32 = vector.load %arg9[%c0_21, %c0_22] : memref<1x1xf32, #tpu.memory_space<vmem>>, vector<1x1xf32>
    %33 = vector.broadcast %32 : vector<1x1xf32> to vector<16x1xf32>
    %34 = arith.addf %31, %33 : vector<16x1xf32>
    %c0_23 = arith.constant 0 : index
    %c0_24 = arith.constant 0 : index
    %35 = vector.load %arg10[%c0_23, %c0_24] : memref<16x1xf32, #tpu.memory_space<vmem>>, vector<16x1xf32>
    tpu.vector_store %arg10[%c0_23, %c0_24], %34 {strides = array<i32>} : memref<16x1xf32, #tpu.memory_space<vmem>>, vector<16x1xf32>,
    return
  }
  func.func @transform_0(%arg0: i32) -> (i32, i32) {
    %c0_i32 = arith.constant 0 : i32
    %c0_i32_0 = arith.constant 0 : i32
    return %arg0, %c0_i32 : i32, i32
  }
  func.func @transform_1(%arg0: i32) -> (i32, i32) {
    %c0_i32 = arith.constant 0 : i32
    %c0_i32_0 = arith.constant 0 : i32
    %c0_i32_1 = arith.constant 0 : i32
    return %c0_i32, %c0_i32_0 : i32, i32
  }
  func.func @transform_2(%arg0: i32) -> (i32, i32) {
    %c0_i32 = arith.constant 0 : i32
    %c0_i32_0 = arith.constant 0 : i32
    %c0_i32_1 = arith.constant 0 : i32
    return %c0_i32, %c0_i32_0 : i32, i32
  }
  func.func @transform_3(%arg0: i32) -> (i32, i32) {
    %c0_i32 = arith.constant 0 : i32
    %c0_i32_0 = arith.constant 0 : i32
    %c0_i32_1 = arith.constant 0 : i32
    return %c0_i32, %c0_i32_0 : i32, i32
  }
  func.func @transform_4(%arg0: i32) -> (i32, i32) {
    %c0_i32 = arith.constant 0 : i32
    %c0_i32_0 = arith.constant 0 : i32
    %c0_i32_1 = arith.constant 0 : i32
    return %c0_i32, %c0_i32_0 : i32, i32
  }
  func.func @transform_5(%arg0: i32) -> (i32, i32) {
    %c0_i32 = arith.constant 0 : i32
    %c0_i32_0 = arith.constant 0 : i32
    %c0_i32_1 = arith.constant 0 : i32
    return %c0_i32, %c0_i32_0 : i32, i32
  }
  func.func @transform_6(%arg0: i32) -> (i32, i32) {
    %c0_i32 = arith.constant 0 : i32
    %c0_i32_0 = arith.constant 0 : i32
    %c0_i32_1 = arith.constant 0 : i32
    return %c0_i32, %c0_i32_0 : i32, i32
  }
  func.func @transform_7(%arg0: i32) -> (i32, i32) {
    %c0_i32 = arith.constant 0 : i32
    %c0_i32_0 = arith.constant 0 : i32
    %c0_i32_1 = arith.constant 0 : i32
    return %c0_i32, %c0_i32_0 : i32, i32
  }
  func.func @transform_8(%arg0: i32) -> (i32, i32) {
    %c0_i32 = arith.constant 0 : i32
    %c0_i32_0 = arith.constant 0 : i32
    %c0_i32_1 = arith.constant 0 : i32
    return %c0_i32, %c0_i32_0 : i32, i32
  }
  func.func @transform_9(%arg0: i32) -> (i32, i32) {
    %c0_i32 = arith.constant 0 : i32
    %c0_i32_0 = arith.constant 0 : i32
    return %arg0, %c0_i32 : i32, i32
  }
}

</mosaic_0001>

<bundles_post_ra>
// kernel: critic_forward.1
= control target key start
LH: loop header
LB: loop body
LE: loop exit
PB: predicated region body
PF: predicated region fallthrough
CT: control target
= control target key end

     0   :  { %s3151_s0 = inlined_call_operand.vmem [shape: bf16[16,32], index: 0, kind: input, shape index: {}]   ;;  %s3152_s1 = inlined_call_operand.hbm [shape: bf16[32,512], index: 1, kind: input, shape index: {}]   ;;  %s3153_s2 = inlined_call_operand.vmem [shape: f32[1,512], index: 2, kind: input, shape index: {}]   ;;  %s3154_s3 = inlined_call_operand.hbm [shape: bf16[512,512], index: 3, kind: input, shape index: {}]   ;;  %s3155_s4 = inlined_call_operand.vmem [shape: f32[1,512], index: 4, kind: input, shape index: {}]   ;;  %s3156_s5 = inlined_call_operand.hbm [shape: bf16[512,512], index: 5, kind: input, shape index: {}]   ;;  %s3157_s6 = inlined_call_operand.vmem [shape: f32[1,512], index: 6, kind: input, shape index: {}]   ;;  %s3158_s7 = inlined_call_operand.vmem [shape: f32[1,512], index: 7, kind: input, shape index: {}]   ;;  %s3159_s8 = inlined_call_operand.<no memory space> [shape: f32[1,1], index: 8, kind: input, shape index: {}]   ;;  %s3160_s9 = inlined_call_operand.vmem [shape: f32[16,1], index: 9, kind: output, shape index: {}]  }
   0x1   :  { %v14_v0 = vstv %s3159_s8 }
   0x2   :  { %15 = vst [vmem:[#allocation2] sm:$0x1] %v14_v0 }
   0x3   :  { %16 = vsyncpa [#allocation4], 0 }
   0x4   :  { %17 = vsyncpa [#allocation6], 0  ;;  %s3016_s11 = smov [#allocation5]   ;;  %s3017_s13 = smov [#allocation3]  }
   0x5   :  { %s39_s12 = sshll.u32 %s3016_s11, 4  ;;  %s25_s14 = sshll.u32 %s3017_s13, 4  ;;  %s40_s12 = int_to_ptr.vmem [resolvable:$true] %s39_s12  ;;  %s26_s14 = int_to_ptr.vmem [resolvable:$true] %s25_s14 }
   0x6   :  { %s2960_s15 = scalar_lea.vmem %s40_s12, 16384  ;;  %p2965_p1 = scmp.lt.s32.totalorder %s40_s12, %s40_s12 }
   0x7   :  { %p2961_p0 = scmp.ne.s32.totalorder %s40_s12, %s2960_s15  ;;  %p2966_p2 = scmp.lt.s32.totalorder %s2960_s15, %s2960_s15 }
   0x9   :  { %p2967_p3 = por %p2966_p2, %p2965_p1 }
   0xb   :  { %p2968_p4 = pnand %p2967_p3, %p2961_p0 }
   0xd   :  { %2971 = shalt.err (!%p2968_p4)
}
   0xe   :  { %s3018_s16 = smov 256   ;;  %s3019_s17 = smov 16  }
   0xf   :  { %45 = dma.hbm_to_vmem [thread:$0]  %s3154_s3, 16384, %s40_s12, [#allocation6], %s3018_s16, %s3018_s16, %s3019_s17  }
  0x10   :  { %s2980_s19 = scalar_lea.vmem %s26_s14, 1024  ;;  %p2985_p6 = scmp.lt.s32.totalorder %s26_s14, %s26_s14 }
  0x11   :  { %p2981_p5 = scmp.ne.s32.totalorder %s26_s14, %s2980_s19  ;;  %p2986_p7 = scmp.lt.s32.totalorder %s2980_s19, %s2980_s19 }
  0x13   :  { %p2987_p8 = por %p2986_p7, %p2985_p6 }
  0x15   :  { %p2988_p9 = pnand %p2987_p8, %p2981_p5 }
  0x17   :  { %2991 = shalt.err (!%p2988_p9)
}
  0x18   :  { %31 = dma.hbm_to_vmem [thread:$0]  %s3152_s1, 1024, %s26_s14, [#allocation4], %s3018_s16, %s3018_s16, %s3019_s17  }
  0x19   :  { %s3020_s22 = smov [#allocation7]  }
  0x1a   :  { %s53_s23 = sshll.u32 %s3020_s22, 4  ;;  %s54_s23 = int_to_ptr.vmem [resolvable:$true] %s53_s23 }
  0x1b   :  { %s3000_s24 = scalar_lea.vmem %s54_s23, 16384  ;;  %p3005_p11 = scmp.lt.s32.totalorder %s54_s23, %s54_s23 }
  0x1c   :  { %p3001_p10 = scmp.ne.s32.totalorder %s54_s23, %s3000_s24  ;;  %p3006_p12 = scmp.lt.s32.totalorder %s3000_s24, %s3000_s24 }
  0x1e   :  { %p3007_p13 = por %p3006_p12, %p3005_p11 }
  0x20   :  { %p3008_p0 = pnand %p3007_p13, %p3001_p10 }
  0x22   :  { %3011 = shalt.err (!%p3008_p0)
}
  0x23   :  { %59 = dma.hbm_to_vmem [thread:$0]  %s3156_s5, 16384, %s54_s23, [#allocation6], %s3018_s16, %s3018_s16, %s3019_s17  }
  0x24   :  { %3012 = dma.done.wait [#allocation4], 1024  }
  0x25   :  { %3013 = vsyncadd [#allocation4], 4294966272 }
  0x26   :  { %3014 = dma.done.wait [#allocation6], 32768  }
  0x27   :  { %3015 = vsyncadd [#allocation6], 4294934528  ;;  %v3021_v1 = vmov 0   ;;  %v2555_v2 = vld [vmem:[#allocation3 + $0x24] ss:$16 sps:$4 sm:$0xff]   ;;  %vm153_vm0 = vcmask 261120  }
  0x28   :  { %189 = vmatprep.mubr.bf16.mxu0 %v3021_v1  ;;  %232 = vmatprep.mubr.bf16.mxu1 %v3021_v1  ;;  %v2557_v3 = vld [vmem:[#allocation3 + $0x2c] ss:$16 sps:$4 sm:$0xff]   ;;  %v2559_v4 = vld [vmem:[#allocation3 + $0x20] ss:$16 sps:$4 sm:$0xff]   ;;  %v2560_v5 = vld [vmem:[#allocation3 + $0x28] ss:$16 sps:$4 sm:$0xff]  }
  0x29   :  { %169 = vmatprep.subr.bf16.mxu0 %v2555_v2  ;;  %212 = vmatprep.subr.bf16.mxu1 %v2557_v3  ;;  %v2561_v6 = vld [vmem:[#allocation3 + $0x4] ss:$16 sps:$4 sm:$0xff]   ;;  %v2563_v7 = vld [vmem:[#allocation3 + $0xc] ss:$16 sps:$4 sm:$0xff]   ;;  %v2565_v8 = vld [vmem:[#allocation3] ss:$16 sps:$4 sm:$0xff]  }
  0x2a   :  { %170 = vmatpush1.bf16.msra.mxu0 %v2559_v4  ;;  %213 = vmatpush1.bf16.msra.mxu1 %v2560_v5  ;;  %v2566_v9 = vld [vmem:[#allocation3 + $0x8] ss:$16 sps:$4 sm:$0xff]   ;;  %v2567_v10 = vld [vmem:[%s3151_s0] sm:$0xff]   ;;  %vm2272_vm1 = vcmask 7168  }
  0x2b   :  { %171 = vmatprep.subr.bf16.mxu0 %v2561_v6  ;;  %214 = vmatprep.subr.bf16.mxu1 %v2563_v7  ;;  %v2568_v11 = vld [vmem:[#allocation5 + $0xe0] ss:$16 sps:$4 sm:$0xff]   ;;  %v2570_v12 = vld [vmem:[#allocation5 + $0xe4] ss:$16 sps:$4 sm:$0xff]  }
  0x2c   :  { %v2571_v13 = vld [vmem:[#allocation5 + $0x2e0] ss:$16 sps:$4 sm:$0xff]   ;;  %v2573_v14 = vld [vmem:[#allocation5 + $0x2e4] ss:$16 sps:$4 sm:$0xff]  }
  0x2d   :  { %v2576_v15 = vld [vmem:[#allocation5 + $0xc4] ss:$16 sps:$4 sm:$0xff]   ;;  %v2574_v17 = vld [vmem:[#allocation5 + $0xc0] ss:$16 sps:$4 sm:$0xff]  }
  0x2e   :  { %172 = vmatpush1.bf16.msra.mxu0 %v2565_v8  ;;  %215 = vmatpush1.bf16.msra.mxu1 %v2566_v9  ;;  %v2579_v16 = vld [vmem:[#allocation5 + $0x2c4] ss:$16 sps:$4 sm:$0xff]   ;;  %v2577_v18 = vld [vmem:[#allocation5 + $0x2c0] ss:$16 sps:$4 sm:$0xff]  }
  0x2f   :  { %1053 = vmatprep.subr.bf16.mxu0 %v2570_v12  ;;  %1096 = vmatprep.subr.bf16.mxu1 %v2573_v14  ;;  %v2582_v19 = vld [vmem:[#allocation5 + $0xa4] ss:$16 sps:$4 sm:$0xff]   ;;  %v2580_v21 = vld [vmem:[#allocation5 + $0xa0] ss:$16 sps:$4 sm:$0xff]   ;;  %v2669_v12 = vld [vmem:[#allocation5 + $0x2ec] ss:$16 sps:$4 sm:$0xff]  }
  0x30   :  { %v2585_v20 = vld [vmem:[#allocation5 + $0x2a4] ss:$16 sps:$4 sm:$0xff]   ;;  %v2583_v22 = vld [vmem:[#allocation5 + $0x2a0] ss:$16 sps:$4 sm:$0xff]  }
  0x31   :  { %2290 = vmatmul.mubr.msk.bf16.vlgmr.msra.gmra.mxu0 %vm153_vm0, %v2567_v10  ;;  %2291 = vmatmul.mubr.msk.bf16.vlgmr.msra.gmra.mxu1 %vm153_vm0, %v2567_v10  ;;  %v2588_v23 = vld [vmem:[#allocation5 + $0x84] ss:$16 sps:$4 sm:$0xff]   ;;  %v2586_v25 = vld [vmem:[#allocation5 + $0x80] ss:$16 sps:$4 sm:$0xff]  }
  0x32   :  { %1054 = vmatpush1.bf16.msra.mxu0 %v2568_v11  ;;  %1097 = vmatpush1.bf16.msra.mxu1 %v2571_v13  ;;  %v2591_v24 = vld [vmem:[#allocation5 + $0x284] ss:$16 sps:$4 sm:$0xff]   ;;  %v2589_v26 = vld [vmem:[#allocation5 + $0x280] ss:$16 sps:$4 sm:$0xff]   ;;  %v2666_v11 = vld [vmem:[#allocation5 + $0xec] ss:$16 sps:$4 sm:$0xff]   ;;  %v88_v13 = vlaneseq }
  0x33   :  { %1055 = vmatprep.subr.bf16.mxu0 %v2576_v15  ;;  %1098 = vmatprep.subr.bf16.mxu1 %v2579_v16  ;;  %v2594_v27 = vld [vmem:[#allocation5 + $0x64] ss:$16 sps:$4 sm:$0xff]   ;;  %v2592_v29 = vld [vmem:[#allocation5 + $0x60] ss:$16 sps:$4 sm:$0xff]  }
  0x34   :  { %v2597_v28 = vld [vmem:[#allocation5 + $0x264] ss:$16 sps:$4 sm:$0xff]   ;;  %v2595_v30 = vld [vmem:[#allocation5 + $0x260] ss:$16 sps:$4 sm:$0xff]   ;;  %v89_v14 = vshrl.u32 %v88_v13, 7 }
  0x35   :  { %v2600_v31 = vld [vmem:[#allocation5 + $0x44] ss:$16 sps:$4 sm:$0xff]   ;;  %v2598_v33 = vld [vmem:[#allocation5 + $0x40] ss:$16 sps:$4 sm:$0xff]   ;;  %v2691_v13 = vld [vmem:[#allocation5 + $0x268] ss:$16 sps:$4 sm:$0xff]  }
  0x36   :  { %1056 = vmatpush1.bf16.msra.mxu0 %v2574_v17  ;;  %1099 = vmatpush1.bf16.msra.mxu1 %v2577_v18  ;;  %v2603_v32 = vld [vmem:[#allocation5 + $0x244] ss:$16 sps:$4 sm:$0xff]   ;;  %v2601_v34 = vld [vmem:[#allocation5 + $0x240] ss:$16 sps:$4 sm:$0xff]   ;;  %v3087_v15 = vsub.s32 0, %v89_v14  ;;  %v3092_v17 = vsub.s32 1, %v89_v14 }
  0x37   :  { %1057 = vmatprep.subr.bf16.mxu0 %v2582_v19  ;;  %1100 = vmatprep.subr.bf16.mxu1 %v2585_v20  ;;  %v2606_v35 = vld [vmem:[#allocation5 + $0x24] ss:$16 sps:$4 sm:$0xff]   ;;  %v2604_v37 = vld [vmem:[#allocation5 + $0x20] ss:$16 sps:$4 sm:$0xff]   ;;  %v3094_v18 = vsub.s32 3, %v89_v14  ;;  %v3096_v19 = vsub.s32 2, %v89_v14 }
  0x38   :  { %v2609_v36 = vld [vmem:[#allocation5 + $0x224] ss:$16 sps:$4 sm:$0xff]   ;;  %v2607_v38 = vld [vmem:[#allocation5 + $0x220] ss:$16 sps:$4 sm:$0xff]   ;;  %v2696_v14 = vld [vmem:[#allocation5 + $0x4c] ss:$16 sps:$4 sm:$0xff]  }
  0x39   :  { %v2612_v39 = vld [vmem:[#allocation5 + $0x4] ss:$16 sps:$4 sm:$0xff]   ;;  %v2610_v41 = vld [vmem:[#allocation5] ss:$16 sps:$4 sm:$0xff]  }
  0x3a   :  { %1058 = vmatpush1.bf16.msra.mxu0 %v2580_v21  ;;  %1101 = vmatpush1.bf16.msra.mxu1 %v2583_v22  ;;  %v2615_v40 = vld [vmem:[#allocation5 + $0x204] ss:$16 sps:$4 sm:$0xff]   ;;  %v2613_v42 = vld [vmem:[#allocation5 + $0x200] ss:$16 sps:$4 sm:$0xff]  }
  0x3b   :  { %1059 = vmatprep.subr.bf16.mxu0 %v2588_v23  ;;  %1102 = vmatprep.subr.bf16.mxu1 %v2591_v24  ;;  %v2618_v43 = vld [vmem:[#allocation5 + $0x1e4] ss:$16 sps:$4 sm:$0xff]   ;;  %v2616_v45 = vld [vmem:[#allocation5 + $0x1e0] ss:$16 sps:$4 sm:$0xff]  }
  0x3c   :  { %v2621_v44 = vld [vmem:[#allocation5 + $0x3e4] ss:$16 sps:$4 sm:$0xff]   ;;  %v2619_v46 = vld [vmem:[#allocation5 + $0x3e0] ss:$16 sps:$4 sm:$0xff]  }
  0x3d   :  { %v2624_v47 = vld [vmem:[#allocation5 + $0x1c4] ss:$16 sps:$4 sm:$0xff]   ;;  %v2622_v49 = vld [vmem:[#allocation5 + $0x1c0] ss:$16 sps:$4 sm:$0xff]  }
  0x3e   :  { %1060 = vmatpush1.bf16.msra.mxu0 %v2586_v25  ;;  %1103 = vmatpush1.bf16.msra.mxu1 %v2589_v26  ;;  %v2627_v48 = vld [vmem:[#allocation5 + $0x3c4] ss:$16 sps:$4 sm:$0xff]   ;;  %v2625_v50 = vld [vmem:[#allocation5 + $0x3c0] ss:$16 sps:$4 sm:$0xff]  }
  0x3f   :  { %1061 = vmatprep.subr.bf16.mxu0 %v2594_v27  ;;  %1104 = vmatprep.subr.bf16.mxu1 %v2597_v28  ;;  %v2630_v51 = vld [vmem:[#allocation5 + $0x1a4] ss:$16 sps:$4 sm:$0xff]   ;;  %v2628_v53 = vld [vmem:[#allocation5 + $0x1a0] ss:$16 sps:$4 sm:$0xff]  }
  0x40   :  { %v2633_v52 = vld [vmem:[#allocation5 + $0x3a4] ss:$16 sps:$4 sm:$0xff]   ;;  %v2631_v54 = vld [vmem:[#allocation5 + $0x3a0] ss:$16 sps:$4 sm:$0xff]  }
  0x41   :  { %v2636_v55 = vld [vmem:[#allocation5 + $0x184] ss:$16 sps:$4 sm:$0xff]   ;;  %v2634_v57 = vld [vmem:[#allocation5 + $0x180] ss:$16 sps:$4 sm:$0xff]  }
  0x42   :  { %1062 = vmatpush1.bf16.msra.mxu0 %v2592_v29  ;;  %1105 = vmatpush1.bf16.msra.mxu1 %v2595_v30  ;;  %v2639_v56 = vld [vmem:[#allocation5 + $0x384] ss:$16 sps:$4 sm:$0xff]   ;;  %v2637_v58 = vld [vmem:[#allocation5 + $0x380] ss:$16 sps:$4 sm:$0xff]  }
  0x43   :  { %1063 = vmatprep.subr.bf16.mxu0 %v2600_v31  ;;  %1106 = vmatprep.subr.bf16.mxu1 %v2603_v32  ;;  %v2642_v59 = vld [vmem:[#allocation5 + $0x164] ss:$16 sps:$4 sm:$0xff]   ;;  %v2640_v61 = vld [vmem:[#allocation5 + $0x160] ss:$16 sps:$4 sm:$0xff]  }
  0x44   :  { %v2645_v60 = vld [vmem:[#allocation5 + $0x364] ss:$16 sps:$4 sm:$0xff]   ;;  %v2643_v62 = vld [vmem:[#allocation5 + $0x360] ss:$16 sps:$4 sm:$0xff]  }
  0x45   :  { %v2648_v63 = vld [vmem:[#allocation5 + $0x144] ss:$16 sps:$4 sm:$0xff]   ;;  %v2646_v1 = vld [vmem:[#allocation5 + $0x140] ss:$16 sps:$4 sm:$0xff]  }
  0x46   :  { %1064 = vmatpush1.bf16.msra.mxu0 %v2598_v33  ;;  %1107 = vmatpush1.bf16.msra.mxu1 %v2601_v34  ;;  %v2651_v0 = vld [vmem:[#allocation5 + $0x344] ss:$16 sps:$4 sm:$0xff]   ;;  %v2649_v2 = vld [vmem:[#allocation5 + $0x340] ss:$16 sps:$4 sm:$0xff]  }
  0x47   :  { %1065 = vmatprep.subr.bf16.mxu0 %v2606_v35  ;;  %1108 = vmatprep.subr.bf16.mxu1 %v2609_v36  ;;  %v2654_v3 = vld [vmem:[#allocation5 + $0x124] ss:$16 sps:$4 sm:$0xff]   ;;  %v2652_v5 = vld [vmem:[#allocation5 + $0x120] ss:$16 sps:$4 sm:$0xff]  }
  0x48   :  { %v2657_v4 = vld [vmem:[#allocation5 + $0x324] ss:$16 sps:$4 sm:$0xff]   ;;  %v2655_v6 = vld [vmem:[#allocation5 + $0x320] ss:$16 sps:$4 sm:$0xff]  }
  0x49   :  { %v2660_v7 = vld [vmem:[#allocation5 + $0x104] ss:$16 sps:$4 sm:$0xff]   ;;  %v2658_v9 = vld [vmem:[#allocation5 + $0x100] ss:$16 sps:$4 sm:$0xff]  }
  0x4a   :  { %1066 = vmatpush1.bf16.msra.mxu0 %v2604_v37  ;;  %1109 = vmatpush1.bf16.msra.mxu1 %v2607_v38  ;;  %v2663_v8 = vld [vmem:[#allocation5 + $0x304] ss:$16 sps:$4 sm:$0xff]   ;;  %v2661_v10 = vld [vmem:[#allocation5 + $0x300] ss:$16 sps:$4 sm:$0xff]  }
  0x4b   :  { %1067 = vmatprep.subr.bf16.mxu0 %v2612_v39  ;;  %1110 = vmatprep.subr.bf16.mxu1 %v2615_v40  ;;  %v86_v16 = vld [vmem:[%s3153_s2] sm:$0xf] }
  0x4c   :  { %v91_v20 = vrot.slane %v86_v16, %v3087_v15  ;;  %v95_v21 = vrot.slane %v86_v16, %v3092_v17  ;;  %v103_v22 = vrot.slane %v86_v16, %v3094_v18  ;;  %v99_v24 = vrot.slane %v86_v16, %v3096_v19  ;;  %v2699_v16 = vld [vmem:[#allocation5 + $0x24c] ss:$16 sps:$4 sm:$0xff]  }
  0x4e   :  { %1068 = vmatpush1.bf16.msra.mxu0 %v2610_v41  ;;  %1111 = vmatpush1.bf16.msra.mxu1 %v2613_v42 }
  0x4f   :  { %1069 = vmatprep.subr.bf16.mxu0 %v2618_v43  ;;  %1112 = vmatprep.subr.bf16.mxu1 %v2621_v44 }
  0x52   :  { %1070 = vmatpush2.bf16.msra.mxu0 %v2616_v45  ;;  %1113 = vmatpush2.bf16.msra.mxu1 %v2619_v46 }
  0x53   :  { %1071 = vmatprep.subr.bf16.mxu0 %v2624_v47  ;;  %1114 = vmatprep.subr.bf16.mxu1 %v2627_v48 }
  0x56   :  { %1072 = vmatpush2.bf16.msra.mxu0 %v2622_v49  ;;  %1115 = vmatpush2.bf16.msra.mxu1 %v2625_v50 }
  0x57   :  { %1073 = vmatprep.subr.bf16.mxu0 %v2630_v51  ;;  %1116 = vmatprep.subr.bf16.mxu1 %v2633_v52 }
  0x5a   :  { %1074 = vmatpush2.bf16.msra.mxu0 %v2628_v53  ;;  %1117 = vmatpush2.bf16.msra.mxu1 %v2631_v54 }
  0x5b   :  { %1075 = vmatprep.subr.bf16.mxu0 %v2636_v55  ;;  %1118 = vmatprep.subr.bf16.mxu1 %v2639_v56 }
  0x5e   :  { %1076 = vmatpush2.bf16.msra.mxu0 %v2634_v57  ;;  %1119 = vmatpush2.bf16.msra.mxu1 %v2637_v58  ;;  %v2664_v58 = vld [vmem:[#allocation5 + $0xe8] ss:$16 sps:$4 sm:$0xff]  }
  0x5f   :  { %1077 = vmatprep.subr.bf16.mxu0 %v2642_v59  ;;  %1120 = vmatprep.subr.bf16.mxu1 %v2645_v60  ;;  %v2667_v59 = vld [vmem:[#allocation5 + $0x2e8] ss:$16 sps:$4 sm:$0xff]  }
  0x62   :  { %1078 = vmatpush2.bf16.msra.mxu0 %v2640_v61  ;;  %1121 = vmatpush2.bf16.msra.mxu1 %v2643_v62  ;;  %v2672_v62 = vld [vmem:[#allocation5 + $0xcc] ss:$16 sps:$4 sm:$0xff]  }
  0x63   :  { %1079 = vmatprep.subr.bf16.mxu0 %v2648_v63  ;;  %1122 = vmatprep.subr.bf16.mxu1 %v2651_v0  ;;  %v2675_v63 = vld [vmem:[#allocation5 + $0x2cc] ss:$16 sps:$4 sm:$0xff]   ;;  %v2670_v0 = vld [vmem:[#allocation5 + $0xc8] ss:$16 sps:$4 sm:$0xff]  }
  0x66   :  { %1080 = vmatpush2.bf16.msra.mxu0 %v2646_v1  ;;  %1123 = vmatpush2.bf16.msra.mxu1 %v2649_v2  ;;  %v2673_v1 = vld [vmem:[#allocation5 + $0x2c8] ss:$16 sps:$4 sm:$0xff]   ;;  %v2678_v2 = vld [vmem:[#allocation5 + $0xac] ss:$16 sps:$4 sm:$0xff]  }
  0x67   :  { %1081 = vmatprep.subr.bf16.mxu0 %v2654_v3  ;;  %1124 = vmatprep.subr.bf16.mxu1 %v2657_v4  ;;  %v2681_v3 = vld [vmem:[#allocation5 + $0x2ac] ss:$16 sps:$4 sm:$0xff]   ;;  %v2676_v4 = vld [vmem:[#allocation5 + $0xa8] ss:$16 sps:$4 sm:$0xff]  }
  0x6a   :  { %1082 = vmatpush2.bf16.msra.mxu0 %v2652_v5  ;;  %1125 = vmatpush2.bf16.msra.mxu1 %v2655_v6  ;;  %v2679_v5 = vld [vmem:[#allocation5 + $0x2a8] ss:$16 sps:$4 sm:$0xff]   ;;  %v2684_v6 = vld [vmem:[#allocation5 + $0x8c] ss:$16 sps:$4 sm:$0xff]  }
  0x6b   :  { %1083 = vmatprep.subr.bf16.mxu0 %v2660_v7  ;;  %1126 = vmatprep.subr.bf16.mxu1 %v2663_v8  ;;  %v2687_v7 = vld [vmem:[#allocation5 + $0x28c] ss:$16 sps:$4 sm:$0xff]   ;;  %v2682_v8 = vld [vmem:[#allocation5 + $0x88] ss:$16 sps:$4 sm:$0xff]  }
  0x6e   :  { %1084 = vmatpush2.bf16.msra.mxu0 %v2658_v9  ;;  %1127 = vmatpush2.bf16.msra.mxu1 %v2661_v10  ;;  %v2685_v9 = vld [vmem:[#allocation5 + $0x288] ss:$16 sps:$4 sm:$0xff]   ;;  %v2690_v10 = vld [vmem:[#allocation5 + $0x6c] ss:$16 sps:$4 sm:$0xff]  }
  0x6f   :  { %1139 = vmatprep.subr.bf16.mxu0 %v2666_v11  ;;  %1182 = vmatprep.subr.bf16.mxu1 %v2669_v12  ;;  %v2693_v11 = vld [vmem:[#allocation5 + $0x26c] ss:$16 sps:$4 sm:$0xff]   ;;  %v2688_v12 = vld [vmem:[#allocation5 + $0x68] ss:$16 sps:$4 sm:$0xff]  }
  0xf1   :  { %v191_v23 = vpop.f32.mrf.mxu0  ;;  %v234_v25 = vpop.f32.mrf.mxu1 }
  0xf2   :  { %v192_v26 = vadd.f32 %v191_v23, %v91_v20  ;;  %v235_v31 = vadd.f32 %v234_v25, %v99_v24  ;;  %v2705_v23 = vld [vmem:[#allocation5 + $0x22c] ss:$16 sps:$4 sm:$0xff]   ;;  %v2703_v25 = vld [vmem:[#allocation5 + $0x228] ss:$16 sps:$4 sm:$0xff]  }
  0xf3   :  { %v193_v27 = vpop.f32.mrf.mxu0  ;;  %v236_v28 = vpop.f32.mrf.mxu1 }
  0xf4   :  { %v194_v29 = vadd.f32 %v193_v27, %v95_v21  ;;  %v237_v30 = vadd.f32 %v236_v28, %v103_v22  ;;  %v243_v34 = vmul.f32 0.01, %v192_v26  ;;  %v245_v43 = vmul.f32 0.01, %v235_v31  ;;  %v2711_v27 = vld [vmem:[#allocation5 + $0x20c] ss:$16 sps:$4 sm:$0xff]  }
  0xf5   :  { %v195_v32 = vpop.f32.mrf.mxu0  ;;  %v238_v33 = vpop.f32.mrf.mxu1  ;;  %v2706_v28 = vld [vmem:[#allocation5 + $0x8] ss:$16 sps:$4 sm:$0xff]  }
  0xf6   :  { %v196_v35 = vadd.f32 %v195_v32, %v91_v20  ;;  %v239_v36 = vadd.f32 %v238_v33, %v99_v24  ;;  %v244_v39 = vmul.f32 0.01, %v194_v29  ;;  %v246_v40 = vmul.f32 0.01, %v237_v30  ;;  %v2694_v20 = vld [vmem:[#allocation5 + $0x48] ss:$16 sps:$4 sm:$0xff]  }
  0xf7   :  { %v197_v37 = vpop.f32.mrf.mxu0  ;;  %v240_v38 = vpop.f32.mrf.mxu1  ;;  %v251_v54 = vmax.f32 %v192_v26, %v243_v34  ;;  %v253_v55 = vmax.f32 %v235_v31, %v245_v43  ;;  %v2700_v24 = vld [vmem:[#allocation5 + $0x28] ss:$16 sps:$4 sm:$0xff]   ;;  %v2708_v26 = vld [vmem:[#allocation5 + $0xc] ss:$16 sps:$4 sm:$0xff]  }
  0xf8   :  { %v198_v41 = vadd.f32 %v197_v37, %v95_v21  ;;  %v241_v42 = vadd.f32 %v240_v38, %v103_v22  ;;  %v247_v44 = vmul.f32 0.01, %v196_v35  ;;  %v249_v45 = vmul.f32 0.01, %v239_v36  ;;  %v2697_v21 = vld [vmem:[#allocation5 + $0x248] ss:$16 sps:$4 sm:$0xff]  }
  0xf9   :  { %v252_v50 = vmax.f32 %v194_v29, %v244_v39  ;;  %v254_v51 = vmax.f32 %v237_v30, %v246_v40  ;;  %v2702_v22 = vld [vmem:[#allocation5 + $0x2c] ss:$16 sps:$4 sm:$0xff]   ;;  %v2709_v29 = vld [vmem:[#allocation5 + $0x208] ss:$16 sps:$4 sm:$0xff]  }
  0xfa   :  { %v248_v46 = vmul.f32 0.01, %v198_v41  ;;  %v250_v47 = vmul.f32 0.01, %v241_v42  ;;  %v255_v48 = vmax.f32 %v196_v35, %v247_v44  ;;  %v257_v49 = vmax.f32 %v239_v36, %v249_v45  ;;  %v2714_v30 = vld [vmem:[#allocation5 + $0x1ec] ss:$16 sps:$4 sm:$0xff]  }
  0xfb   :  { %v2717_v31 = vld [vmem:[#allocation5 + $0x3ec] ss:$16 sps:$4 sm:$0xff]   ;;  %v2712_v32 = vld [vmem:[#allocation5 + $0x1e8] ss:$16 sps:$4 sm:$0xff]  }
  0xfc   :  { %v256_v52 = vmax.f32 %v198_v41, %v248_v46  ;;  %v258_v53 = vmax.f32 %v241_v42, %v250_v47  ;;  %v3102_v60 = vpack.c.bf16 %v255_v48, %v251_v54  ;;  %v3104_v61 = vpack.c.bf16 %v257_v49, %v253_v55  ;;  %v2715_v33 = vld [vmem:[#allocation5 + $0x3e8] ss:$16 sps:$4 sm:$0xff]   ;;  %v2720_v34 = vld [vmem:[#allocation5 + $0x1cc] ss:$16 sps:$4 sm:$0xff]  }
  0xfd   :  { %v2723_v35 = vld [vmem:[#allocation5 + $0x3cc] ss:$16 sps:$4 sm:$0xff]   ;;  %v2718_v36 = vld [vmem:[#allocation5 + $0x1c8] ss:$16 sps:$4 sm:$0xff]  }
  0xfe   :  { %v260_v56 = vpack.c.bf16 %v256_v52, %v252_v50  ;;  %v262_v57 = vpack.c.bf16 %v258_v53, %v254_v51  ;;  %v2721_v37 = vld [vmem:[#allocation5 + $0x3c8] ss:$16 sps:$4 sm:$0xff]   ;;  %v2726_v38 = vld [vmem:[#allocation5 + $0x1ac] ss:$16 sps:$4 sm:$0xff]  }
  0xff   :  { %v2729_v39 = vld [vmem:[#allocation5 + $0x3ac] ss:$16 sps:$4 sm:$0xff]   ;;  %v2724_v40 = vld [vmem:[#allocation5 + $0x1a8] ss:$16 sps:$4 sm:$0xff]  }
 0x100   :  { %1085 = vmatprep.mubr.bf16.mxu0 %v260_v56  ;;  %1128 = vmatprep.mubr.bf16.mxu1 %v262_v57  ;;  %v2727_v41 = vld [vmem:[#allocation5 + $0x3a8] ss:$16 sps:$4 sm:$0xff]   ;;  %v2732_v42 = vld [vmem:[#allocation5 + $0x18c] ss:$16 sps:$4 sm:$0xff]  }
 0x101   :  { %1086 = vmatmul.mubr.bf16.vlgmr.msra.gmra.mxu0 %v3102_v60  ;;  %1129 = vmatmul.mubr.bf16.vlgmr.msra.gmra.mxu1 %v3104_v61  ;;  %v2735_v43 = vld [vmem:[#allocation5 + $0x38c] ss:$16 sps:$4 sm:$0xff]   ;;  %v2730_v44 = vld [vmem:[#allocation5 + $0x188] ss:$16 sps:$4 sm:$0xff]  }
 0x102   :  { %1140 = vmatpush1.bf16.msra.mxu0 %v2664_v58  ;;  %1183 = vmatpush1.bf16.msra.mxu1 %v2667_v59  ;;  %v2733_v45 = vld [vmem:[#allocation5 + $0x388] ss:$16 sps:$4 sm:$0xff]   ;;  %v2738_v46 = vld [vmem:[#allocation5 + $0x16c] ss:$16 sps:$4 sm:$0xff]  }
 0x103   :  { %1171 = vmatprep.mubr.bf16.mxu0 %v260_v56  ;;  %1214 = vmatprep.mubr.bf16.mxu1 %v262_v57  ;;  %v2741_v47 = vld [vmem:[#allocation5 + $0x36c] ss:$16 sps:$4 sm:$0xff]   ;;  %v2736_v48 = vld [vmem:[#allocation5 + $0x168] ss:$16 sps:$4 sm:$0xff]  }
 0x104   :  { %1141 = vmatprep.subr.bf16.mxu0 %v2672_v62  ;;  %1184 = vmatprep.subr.bf16.mxu1 %v2675_v63  ;;  %v2739_v49 = vld [vmem:[#allocation5 + $0x368] ss:$16 sps:$4 sm:$0xff]   ;;  %v2744_v50 = vld [vmem:[#allocation5 + $0x14c] ss:$16 sps:$4 sm:$0xff]  }
 0x105   :  { %v2747_v51 = vld [vmem:[#allocation5 + $0x34c] ss:$16 sps:$4 sm:$0xff]   ;;  %v2742_v52 = vld [vmem:[#allocation5 + $0x148] ss:$16 sps:$4 sm:$0xff]  }
 0x106   :  { %1142 = vmatpush1.bf16.msra.mxu0 %v2670_v0  ;;  %1185 = vmatpush1.bf16.msra.mxu1 %v2673_v1  ;;  %v2745_v53 = vld [vmem:[#allocation5 + $0x348] ss:$16 sps:$4 sm:$0xff]   ;;  %v2750_v54 = vld [vmem:[#allocation5 + $0x12c] ss:$16 sps:$4 sm:$0xff]   ;;  %v2762_v0 = vld [vmem:[#allocation7 + $0xe4] ss:$16 sps:$4 sm:$0xff]  }
 0x107   :  { %1143 = vmatprep.subr.bf16.mxu0 %v2678_v2  ;;  %1186 = vmatprep.subr.bf16.mxu1 %v2681_v3  ;;  %v2753_v55 = vld [vmem:[#allocation5 + $0x32c] ss:$16 sps:$4 sm:$0xff]   ;;  %v2748_v56 = vld [vmem:[#allocation5 + $0x128] ss:$16 sps:$4 sm:$0xff]   ;;  %v2760_v1 = vld [vmem:[#allocation7 + $0xe0] ss:$16 sps:$4 sm:$0xff]  }
 0x108   :  { %v2751_v57 = vld [vmem:[#allocation5 + $0x328] ss:$16 sps:$4 sm:$0xff]   ;;  %v2756_v58 = vld [vmem:[#allocation5 + $0x10c] ss:$16 sps:$4 sm:$0xff]   ;;  %v2765_v2 = vld [vmem:[#allocation7 + $0xc4] ss:$16 sps:$4 sm:$0xff]  }
 0x109   :  { %v2759_v59 = vld [vmem:[#allocation5 + $0x30c] ss:$16 sps:$4 sm:$0xff]   ;;  %v2754_v62 = vld [vmem:[#allocation5 + $0x108] ss:$16 sps:$4 sm:$0xff]   ;;  %v2763_v3 = vld [vmem:[#allocation7 + $0xc0] ss:$16 sps:$4 sm:$0xff]  }
 0x10a   :  { %1144 = vmatpush1.bf16.msra.mxu0 %v2676_v4  ;;  %1187 = vmatpush1.bf16.msra.mxu1 %v2679_v5  ;;  %v2757_v63 = vld [vmem:[#allocation5 + $0x308] ss:$16 sps:$4 sm:$0xff]   ;;  %v2768_v4 = vld [vmem:[#allocation7 + $0xa4] ss:$16 sps:$4 sm:$0xff]   ;;  %v2766_v5 = vld [vmem:[#allocation7 + $0xa0] ss:$16 sps:$4 sm:$0xff]  }
 0x10b   :  { %1145 = vmatprep.subr.bf16.mxu0 %v2684_v6  ;;  %1188 = vmatprep.subr.bf16.mxu1 %v2687_v7  ;;  %v2771_v6 = vld [vmem:[#allocation7 + $0x84] ss:$16 sps:$4 sm:$0xff]   ;;  %v2769_v7 = vld [vmem:[#allocation7 + $0x80] ss:$16 sps:$4 sm:$0xff]  }
 0x10e   :  { %1146 = vmatpush1.bf16.msra.mxu0 %v2682_v8  ;;  %1189 = vmatpush1.bf16.msra.mxu1 %v2685_v9  ;;  %v2774_v8 = vld [vmem:[#allocation7 + $0x64] ss:$16 sps:$4 sm:$0xff]   ;;  %v2772_v9 = vld [vmem:[#allocation7 + $0x60] ss:$16 sps:$4 sm:$0xff]  }
 0x10f   :  { %1147 = vmatprep.subr.bf16.mxu0 %v2690_v10  ;;  %1190 = vmatprep.subr.bf16.mxu1 %v2693_v11  ;;  %v2808_v10 = vld [vmem:[#allocation7 + $0x2e0] ss:$16 sps:$4 sm:$0xff]   ;;  %v2810_v11 = vld [vmem:[#allocation7 + $0x2e4] ss:$16 sps:$4 sm:$0xff]  }
 0x112   :  { %1148 = vmatpush1.bf16.msra.mxu0 %v2688_v12  ;;  %1191 = vmatpush1.bf16.msra.mxu1 %v2691_v13  ;;  %v2780_v12 = vld [vmem:[#allocation7 + $0x24] ss:$16 sps:$4 sm:$0xff]   ;;  %v2814_v13 = vld [vmem:[#allocation7 + $0x2c0] ss:$16 sps:$4 sm:$0xff]  }
 0x113   :  { %1149 = vmatprep.subr.bf16.mxu0 %v2696_v14  ;;  %1192 = vmatprep.subr.bf16.mxu1 %v2699_v16  ;;  %v2816_v14 = vld [vmem:[#allocation7 + $0x2c4] ss:$16 sps:$4 sm:$0xff]   ;;  %v2778_v16 = vld [vmem:[#allocation7 + $0x20] ss:$16 sps:$4 sm:$0xff]  }
 0x116   :  { %1150 = vmatpush1.bf16.msra.mxu0 %v2694_v20  ;;  %1193 = vmatpush1.bf16.msra.mxu1 %v2697_v21  ;;  %v2783_v20 = vld [vmem:[#allocation7 + $0x4] ss:$16 sps:$4 sm:$0xff]   ;;  %v2820_v21 = vld [vmem:[#allocation7 + $0x2a0] ss:$16 sps:$4 sm:$0xff]  }
 0x117   :  { %1151 = vmatprep.subr.bf16.mxu0 %v2702_v22  ;;  %1194 = vmatprep.subr.bf16.mxu1 %v2705_v23  ;;  %v2822_v22 = vld [vmem:[#allocation7 + $0x2a4] ss:$16 sps:$4 sm:$0xff]   ;;  %v2781_v23 = vld [vmem:[#allocation7] ss:$16 sps:$4 sm:$0xff]  }
 0x11a   :  { %1152 = vmatpush1.bf16.msra.mxu0 %v2700_v24  ;;  %1195 = vmatpush1.bf16.msra.mxu1 %v2703_v25  ;;  %v2786_v24 = vld [vmem:[#allocation7 + $0x1e4] ss:$16 sps:$4 sm:$0xff]   ;;  %v2826_v25 = vld [vmem:[#allocation7 + $0x280] ss:$16 sps:$4 sm:$0xff]  }
 0x11b   :  { %1153 = vmatprep.subr.bf16.mxu0 %v2708_v26  ;;  %1196 = vmatprep.subr.bf16.mxu1 %v2711_v27  ;;  %v2828_v26 = vld [vmem:[#allocation7 + $0x284] ss:$16 sps:$4 sm:$0xff]   ;;  %v2784_v27 = vld [vmem:[#allocation7 + $0x1e0] ss:$16 sps:$4 sm:$0xff]  }
 0x11e   :  { %1154 = vmatpush1.bf16.msra.mxu0 %v2706_v28  ;;  %1197 = vmatpush1.bf16.msra.mxu1 %v2709_v29  ;;  %v2789_v28 = vld [vmem:[#allocation7 + $0x1c4] ss:$16 sps:$4 sm:$0xff]   ;;  %v2832_v29 = vld [vmem:[#allocation7 + $0x260] ss:$16 sps:$4 sm:$0xff]  }
 0x11f   :  { %1155 = vmatprep.subr.bf16.mxu0 %v2714_v30  ;;  %1198 = vmatprep.subr.bf16.mxu1 %v2717_v31  ;;  %v2834_v30 = vld [vmem:[#allocation7 + $0x264] ss:$16 sps:$4 sm:$0xff]   ;;  %v2787_v31 = vld [vmem:[#allocation7 + $0x1c0] ss:$16 sps:$4 sm:$0xff]  }
 0x122   :  { %1156 = vmatpush2.bf16.msra.mxu0 %v2712_v32  ;;  %1199 = vmatpush2.bf16.msra.mxu1 %v2715_v33  ;;  %v2792_v32 = vld [vmem:[#allocation7 + $0x1a4] ss:$16 sps:$4 sm:$0xff]   ;;  %v2838_v33 = vld [vmem:[#allocation7 + $0x240] ss:$16 sps:$4 sm:$0xff]  }
 0x123   :  { %1157 = vmatprep.subr.bf16.mxu0 %v2720_v34  ;;  %1200 = vmatprep.subr.bf16.mxu1 %v2723_v35  ;;  %v2840_v34 = vld [vmem:[#allocation7 + $0x244] ss:$16 sps:$4 sm:$0xff]   ;;  %v2790_v35 = vld [vmem:[#allocation7 + $0x1a0] ss:$16 sps:$4 sm:$0xff]  }
 0x126   :  { %1158 = vmatpush2.bf16.msra.mxu0 %v2718_v36  ;;  %1201 = vmatpush2.bf16.msra.mxu1 %v2721_v37  ;;  %v2795_v36 = vld [vmem:[#allocation7 + $0x184] ss:$16 sps:$4 sm:$0xff]   ;;  %v2844_v37 = vld [vmem:[#allocation7 + $0x220] ss:$16 sps:$4 sm:$0xff]  }
 0x127   :  { %1159 = vmatprep.subr.bf16.mxu0 %v2726_v38  ;;  %1202 = vmatprep.subr.bf16.mxu1 %v2729_v39  ;;  %v2846_v38 = vld [vmem:[#allocation7 + $0x224] ss:$16 sps:$4 sm:$0xff]   ;;  %v2793_v39 = vld [vmem:[#allocation7 + $0x180] ss:$16 sps:$4 sm:$0xff]  }
 0x12a   :  { %1160 = vmatpush2.bf16.msra.mxu0 %v2724_v40  ;;  %1203 = vmatpush2.bf16.msra.mxu1 %v2727_v41  ;;  %v2798_v40 = vld [vmem:[#allocation7 + $0x164] ss:$16 sps:$4 sm:$0xff]   ;;  %v2850_v41 = vld [vmem:[#allocation7 + $0x200] ss:$16 sps:$4 sm:$0xff]  }
 0x12b   :  { %1161 = vmatprep.subr.bf16.mxu0 %v2732_v42  ;;  %1204 = vmatprep.subr.bf16.mxu1 %v2735_v43  ;;  %v2852_v42 = vld [vmem:[#allocation7 + $0x204] ss:$16 sps:$4 sm:$0xff]   ;;  %v2796_v43 = vld [vmem:[#allocation7 + $0x160] ss:$16 sps:$4 sm:$0xff]  }
 0x12e   :  { %1162 = vmatpush2.bf16.msra.mxu0 %v2730_v44  ;;  %1205 = vmatpush2.bf16.msra.mxu1 %v2733_v45  ;;  %v2801_v44 = vld [vmem:[#allocation7 + $0x144] ss:$16 sps:$4 sm:$0xff]   ;;  %v2856_v45 = vld [vmem:[#allocation7 + $0x3e0] ss:$16 sps:$4 sm:$0xff]  }
 0x12f   :  { %1163 = vmatprep.subr.bf16.mxu0 %v2738_v46  ;;  %1206 = vmatprep.subr.bf16.mxu1 %v2741_v47  ;;  %v2858_v46 = vld [vmem:[#allocation7 + $0x3e4] ss:$16 sps:$4 sm:$0xff]   ;;  %v2799_v47 = vld [vmem:[#allocation7 + $0x140] ss:$16 sps:$4 sm:$0xff]  }
 0x132   :  { %1164 = vmatpush2.bf16.msra.mxu0 %v2736_v48  ;;  %1207 = vmatpush2.bf16.msra.mxu1 %v2739_v49  ;;  %v2804_v48 = vld [vmem:[#allocation7 + $0x124] ss:$16 sps:$4 sm:$0xff]   ;;  %v2862_v49 = vld [vmem:[#allocation7 + $0x3c0] ss:$16 sps:$4 sm:$0xff]  }
 0x133   :  { %1165 = vmatprep.subr.bf16.mxu0 %v2744_v50  ;;  %1208 = vmatprep.subr.bf16.mxu1 %v2747_v51  ;;  %v2864_v50 = vld [vmem:[#allocation7 + $0x3c4] ss:$16 sps:$4 sm:$0xff]   ;;  %v2802_v51 = vld [vmem:[#allocation7 + $0x120] ss:$16 sps:$4 sm:$0xff]  }
 0x136   :  { %1166 = vmatpush2.bf16.msra.mxu0 %v2742_v52  ;;  %1209 = vmatpush2.bf16.msra.mxu1 %v2745_v53  ;;  %v2807_v52 = vld [vmem:[#allocation7 + $0x104] ss:$16 sps:$4 sm:$0xff]   ;;  %v2868_v53 = vld [vmem:[#allocation7 + $0x3a0] ss:$16 sps:$4 sm:$0xff]  }
 0x137   :  { %1167 = vmatprep.subr.bf16.mxu0 %v2750_v54  ;;  %1210 = vmatprep.subr.bf16.mxu1 %v2753_v55  ;;  %v2870_v54 = vld [vmem:[#allocation7 + $0x3a4] ss:$16 sps:$4 sm:$0xff]   ;;  %v2805_v55 = vld [vmem:[#allocation7 + $0x100] ss:$16 sps:$4 sm:$0xff]  }
 0x13a   :  { %1168 = vmatpush2.bf16.msra.mxu0 %v2748_v56  ;;  %1211 = vmatpush2.bf16.msra.mxu1 %v2751_v57  ;;  %v2813_v56 = vld [vmem:[#allocation7 + $0xec] ss:$16 sps:$4 sm:$0xff]   ;;  %v2874_v57 = vld [vmem:[#allocation7 + $0x380] ss:$16 sps:$4 sm:$0xff]  }
 0x13b   :  { %1169 = vmatprep.subr.bf16.mxu0 %v2756_v58  ;;  %1212 = vmatprep.subr.bf16.mxu1 %v2759_v59  ;;  %v2876_v58 = vld [vmem:[#allocation7 + $0x384] ss:$16 sps:$4 sm:$0xff]  }
 0x13c   :  { %v2882_v59 = vld [vmem:[#allocation7 + $0x364] ss:$16 sps:$4 sm:$0xff]  }
 0x13e   :  { %1170 = vmatpush2.bf16.msra.mxu0 %v2754_v62  ;;  %1213 = vmatpush2.bf16.msra.mxu1 %v2757_v63  ;;  %v2880_v62 = vld [vmem:[#allocation7 + $0x360] ss:$16 sps:$4 sm:$0xff]   ;;  %v2888_v63 = vld [vmem:[#allocation7 + $0x344] ss:$16 sps:$4 sm:$0xff]  }
 0x13f   :  { %2035 = vmatprep.subr.bf16.mxu0 %v2762_v0  ;;  %2078 = vmatprep.subr.bf16.mxu1 %v2810_v11  ;;  %v2886_v0 = vld [vmem:[#allocation7 + $0x340] ss:$16 sps:$4 sm:$0xff]  }
 0x141   :  { %1172 = vmatmul.mubr.bf16.vlgmr.msra.gmra.mxu0 %v3102_v60  ;;  %1215 = vmatmul.mubr.bf16.vlgmr.msra.gmra.mxu1 %v3104_v61  ;;  %v2777_v60 = vld [vmem:[#allocation7 + $0x44] ss:$16 sps:$4 sm:$0xff]   ;;  %v2775_v61 = vld [vmem:[#allocation7 + $0x40] ss:$16 sps:$4 sm:$0xff]  }
 0x142   :  { %2036 = vmatpush1.bf16.msra.mxu0 %v2760_v1  ;;  %2079 = vmatpush1.bf16.msra.mxu1 %v2808_v10  ;;  %v2894_v1 = vld [vmem:[#allocation7 + $0x324] ss:$16 sps:$4 sm:$0xff]  }
 0x143   :  { %2037 = vmatprep.subr.bf16.mxu0 %v2765_v2  ;;  %2080 = vmatprep.subr.bf16.mxu1 %v2816_v14  ;;  %v2892_v2 = vld [vmem:[#allocation7 + $0x320] ss:$16 sps:$4 sm:$0xff]  }
 0x146   :  { %2038 = vmatpush1.bf16.msra.mxu0 %v2763_v3  ;;  %2081 = vmatpush1.bf16.msra.mxu1 %v2814_v13  ;;  %v2900_v3 = vld [vmem:[#allocation7 + $0x304] ss:$16 sps:$4 sm:$0xff]  }
 0x147   :  { %2039 = vmatprep.subr.bf16.mxu0 %v2768_v4  ;;  %2082 = vmatprep.subr.bf16.mxu1 %v2822_v22  ;;  %v2898_v4 = vld [vmem:[#allocation7 + $0x300] ss:$16 sps:$4 sm:$0xff]  }
 0x14a   :  { %2040 = vmatpush1.bf16.msra.mxu0 %v2766_v5  ;;  %2083 = vmatpush1.bf16.msra.mxu1 %v2820_v21  ;;  %v2906_v5 = vld [vmem:[#allocation7 + $0x2ec] ss:$16 sps:$4 sm:$0xff]  }
 0x14b   :  { %2041 = vmatprep.subr.bf16.mxu0 %v2771_v6  ;;  %2084 = vmatprep.subr.bf16.mxu1 %v2828_v26  ;;  %v3113_v6 = vld [vmem:[%s3155_s4] sm:$0xf] }
 0x14e   :  { %2042 = vmatpush1.bf16.msra.mxu0 %v2769_v7  ;;  %2085 = vmatpush1.bf16.msra.mxu1 %v2826_v25  ;;  %v396_v7 = vrot.slane %v3113_v6, %v3087_v15 }
 0x14f   :  { %2043 = vmatprep.subr.bf16.mxu0 %v2774_v8  ;;  %2086 = vmatprep.subr.bf16.mxu1 %v2834_v30  ;;  %v400_v8 = vrot.slane %v3113_v6, %v3092_v17 }
 0x152   :  { %2044 = vmatpush1.bf16.msra.mxu0 %v2772_v9  ;;  %2087 = vmatpush1.bf16.msra.mxu1 %v2832_v29 }
 0x153   :  { %2045 = vmatprep.subr.bf16.mxu0 %v2777_v60  ;;  %2088 = vmatprep.subr.bf16.mxu1 %v2840_v34 }
 0x156   :  { %2046 = vmatpush1.bf16.msra.mxu0 %v2775_v61  ;;  %2089 = vmatpush1.bf16.msra.mxu1 %v2838_v33 }
 0x157   :  { %2047 = vmatprep.subr.bf16.mxu0 %v2780_v12  ;;  %2090 = vmatprep.subr.bf16.mxu1 %v2846_v38  ;;  %v2819_v38 = vld [vmem:[#allocation7 + $0xcc] ss:$16 sps:$4 sm:$0xff]  }
 0x15a   :  { %2048 = vmatpush1.bf16.msra.mxu0 %v2778_v16  ;;  %2091 = vmatpush1.bf16.msra.mxu1 %v2844_v37 }
 0x15b   :  { %2049 = vmatprep.subr.bf16.mxu0 %v2783_v20  ;;  %2092 = vmatprep.subr.bf16.mxu1 %v2852_v42  ;;  %v2831_v42 = vld [vmem:[#allocation7 + $0x8c] ss:$16 sps:$4 sm:$0xff]  }
 0x15e   :  { %2050 = vmatpush1.bf16.msra.mxu0 %v2781_v23  ;;  %2093 = vmatpush1.bf16.msra.mxu1 %v2850_v41  ;;  %v2823_v41 = vld [vmem:[#allocation7 + $0xa8] ss:$16 sps:$4 sm:$0xff]  }
 0x15f   :  { %2051 = vmatprep.subr.bf16.mxu0 %v2786_v24  ;;  %2094 = vmatprep.subr.bf16.mxu1 %v2858_v46  ;;  %v2843_v46 = vld [vmem:[#allocation7 + $0x4c] ss:$16 sps:$4 sm:$0xff]  }
 0x162   :  { %2052 = vmatpush2.bf16.msra.mxu0 %v2784_v27  ;;  %2095 = vmatpush2.bf16.msra.mxu1 %v2856_v45  ;;  %v2835_v45 = vld [vmem:[#allocation7 + $0x68] ss:$16 sps:$4 sm:$0xff]  }
 0x163   :  { %2053 = vmatprep.subr.bf16.mxu0 %v2789_v28  ;;  %2096 = vmatprep.subr.bf16.mxu1 %v2864_v50  ;;  %v2855_v50 = vld [vmem:[#allocation7 + $0xc] ss:$16 sps:$4 sm:$0xff]  }
 0x166   :  { %2054 = vmatpush2.bf16.msra.mxu0 %v2787_v31  ;;  %2097 = vmatpush2.bf16.msra.mxu1 %v2862_v49  ;;  %v2847_v49 = vld [vmem:[#allocation7 + $0x28] ss:$16 sps:$4 sm:$0xff]  }
 0x167   :  { %2055 = vmatprep.subr.bf16.mxu0 %v2792_v32  ;;  %2098 = vmatprep.subr.bf16.mxu1 %v2870_v54  ;;  %v2867_v54 = vld [vmem:[#allocation7 + $0x1cc] ss:$16 sps:$4 sm:$0xff]  }
 0x16a   :  { %2056 = vmatpush2.bf16.msra.mxu0 %v2790_v35  ;;  %2099 = vmatpush2.bf16.msra.mxu1 %v2868_v53  ;;  %v2859_v53 = vld [vmem:[#allocation7 + $0x1e8] ss:$16 sps:$4 sm:$0xff]  }
 0x16b   :  { %2057 = vmatprep.subr.bf16.mxu0 %v2795_v36  ;;  %2100 = vmatprep.subr.bf16.mxu1 %v2876_v58  ;;  %v2811_v36 = vld [vmem:[#allocation7 + $0xe8] ss:$16 sps:$4 sm:$0xff]   ;;  %v2879_v58 = vld [vmem:[#allocation7 + $0x18c] ss:$16 sps:$4 sm:$0xff]  }
 0x16e   :  { %2058 = vmatpush2.bf16.msra.mxu0 %v2793_v39  ;;  %2101 = vmatpush2.bf16.msra.mxu1 %v2874_v57  ;;  %v2817_v39 = vld [vmem:[#allocation7 + $0xc8] ss:$16 sps:$4 sm:$0xff]  }
 0x16f   :  { %2059 = vmatprep.subr.bf16.mxu0 %v2798_v40  ;;  %2102 = vmatprep.subr.bf16.mxu1 %v2882_v59  ;;  %v2825_v40 = vld [vmem:[#allocation7 + $0xac] ss:$16 sps:$4 sm:$0xff]   ;;  %v2871_v57 = vld [vmem:[#allocation7 + $0x1a8] ss:$16 sps:$4 sm:$0xff]  }
 0x170   :  { %v2877_v59 = vld [vmem:[#allocation7 + $0x188] ss:$16 sps:$4 sm:$0xff]  }
 0x172   :  { %2060 = vmatpush2.bf16.msra.mxu0 %v2796_v43  ;;  %2103 = vmatpush2.bf16.msra.mxu1 %v2880_v62  ;;  %v2829_v43 = vld [vmem:[#allocation7 + $0x88] ss:$16 sps:$4 sm:$0xff]   ;;  %v2885_v62 = vld [vmem:[#allocation7 + $0x16c] ss:$16 sps:$4 sm:$0xff]  }
 0x173   :  { %2061 = vmatprep.subr.bf16.mxu0 %v2801_v44  ;;  %2104 = vmatprep.subr.bf16.mxu1 %v2888_v63  ;;  %v2837_v44 = vld [vmem:[#allocation7 + $0x6c] ss:$16 sps:$4 sm:$0xff]   ;;  %v404_v63 = vrot.slane %v3113_v6, %v3096_v19 }
 0x176   :  { %2062 = vmatpush2.bf16.msra.mxu0 %v2799_v47  ;;  %2105 = vmatpush2.bf16.msra.mxu1 %v2886_v0  ;;  %v2841_v47 = vld [vmem:[#allocation7 + $0x48] ss:$16 sps:$4 sm:$0xff]   ;;  %v408_v0 = vrot.slane %v3113_v6, %v3094_v18 }
 0x177   :  { %2063 = vmatprep.subr.bf16.mxu0 %v2804_v48  ;;  %2106 = vmatprep.subr.bf16.mxu1 %v2894_v1  ;;  %v2849_v48 = vld [vmem:[#allocation7 + $0x2c] ss:$16 sps:$4 sm:$0xff]   ;;  %v2883_v1 = vld [vmem:[#allocation7 + $0x168] ss:$16 sps:$4 sm:$0xff]  }
 0x17a   :  { %2064 = vmatpush2.bf16.msra.mxu0 %v2802_v51  ;;  %2107 = vmatpush2.bf16.msra.mxu1 %v2892_v2  ;;  %v2853_v51 = vld [vmem:[#allocation7 + $0x8] ss:$16 sps:$4 sm:$0xff]  }
 0x17b   :  { %2065 = vmatprep.subr.bf16.mxu0 %v2807_v52  ;;  %2108 = vmatprep.subr.bf16.mxu1 %v2900_v3  ;;  %v2861_v52 = vld [vmem:[#allocation7 + $0x1ec] ss:$16 sps:$4 sm:$0xff]  }
 0x17e   :  { %2066 = vmatpush2.bf16.msra.mxu0 %v2805_v55  ;;  %2109 = vmatpush2.bf16.msra.mxu1 %v2898_v4  ;;  %v2865_v55 = vld [vmem:[#allocation7 + $0x1c8] ss:$16 sps:$4 sm:$0xff]   ;;  %v2891_v4 = vld [vmem:[#allocation7 + $0x14c] ss:$16 sps:$4 sm:$0xff]  }
 0x17f   :  { %2121 = vmatprep.subr.bf16.mxu0 %v2813_v56  ;;  %2164 = vmatprep.subr.bf16.mxu1 %v2906_v5  ;;  %v2873_v56 = vld [vmem:[#allocation7 + $0x1ac] ss:$16 sps:$4 sm:$0xff]  }
 0x1c1   :  { %v1087_v9 = vpop.f32.mrf.mxu0  ;;  %v1130_v10 = vpop.f32.mrf.mxu1 }
 0x1c2   :  { %v1088_v11 = vadd.f32 %v1087_v9, %v396_v7 }
 0x1c3   :  { %v1089_v60 = vpop.f32.mrf.mxu0  ;;  %v1132_v61 = vpop.f32.mrf.mxu1 }
 0x1c4   :  { %v1090_v12 = vadd.f32 %v1089_v60, %v400_v8  ;;  %v1131_v21 = vadd.f32 %v1130_v10, %v1088_v11  ;;  %v2889_v10 = vld [vmem:[#allocation7 + $0x148] ss:$16 sps:$4 sm:$0xff]  }
 0x1c5   :  { %v1091_v13 = vpop.f32.mrf.mxu0  ;;  %v1134_v14 = vpop.f32.mrf.mxu1 }
 0x1c6   :  { %v1133_v16 = vadd.f32 %v1132_v61, %v1090_v12  ;;  %v1092_v20 = vadd.f32 %v1091_v13, %v396_v7  ;;  %v1225_v29 = vmul.f32 0.01, %v1131_v21  ;;  %v2897_v61 = vld [vmem:[#allocation7 + $0x12c] ss:$16 sps:$4 sm:$0xff]  }
 0x1c7   :  { %v1093_v22 = vpop.f32.mrf.mxu0  ;;  %v1136_v25 = vpop.f32.mrf.mxu1 }
 0x1c8   :  { %v1135_v23 = vadd.f32 %v1134_v14, %v1092_v20  ;;  %v1094_v24 = vadd.f32 %v1093_v22, %v400_v8  ;;  %v1226_v26 = vmul.f32 0.01, %v1133_v16  ;;  %v1233_v34 = vmax.f32 %v1131_v21, %v1225_v29  ;;  %v2895_v21 = vld [vmem:[#allocation7 + $0x128] ss:$16 sps:$4 sm:$0xff]  }
 0x1c9   :  { %v2901_v29 = vld [vmem:[#allocation7 + $0x108] ss:$16 sps:$4 sm:$0xff]  }
 0x1ca   :  { %v1229_v27 = vmul.f32 0.01, %v1135_v23  ;;  %v1137_v28 = vadd.f32 %v1136_v25, %v1094_v24  ;;  %v1234_v32 = vmax.f32 %v1133_v16, %v1226_v26 }
 0x1cc   :  { %v1230_v30 = vmul.f32 0.01, %v1137_v28  ;;  %v1237_v31 = vmax.f32 %v1135_v23, %v1229_v27  ;;  %v2903_v23 = vld [vmem:[#allocation7 + $0x10c] ss:$16 sps:$4 sm:$0xff]  }
 0x1ce   :  { %v1238_v33 = vmax.f32 %v1137_v28, %v1230_v30  ;;  %v3119_v37 = vpack.c.bf16 %v1237_v31, %v1233_v34 }
 0x1d0   :  { %v1242_v35 = vpack.c.bf16 %v1238_v33, %v1234_v32 }
 0x1d2   :  { %2067 = vmatprep.mubr.bf16.mxu0 %v1242_v35 }
 0x1d3   :  { %2068 = vmatmul.mubr.bf16.vlgmr.msra.gmra.mxu0 %v3119_v37 }
 0x1d4   :  { %2122 = vmatpush1.bf16.msra.mxu0 %v2811_v36  ;;  %2153 = vmatprep.mubr.bf16.mxu0 %v1242_v35  ;;  %v2904_v35 = vld [vmem:[#allocation7 + $0x2e8] ss:$16 sps:$4 sm:$0xff]  }
 0x1d5   :  { %2123 = vmatprep.subr.bf16.mxu0 %v2819_v38  ;;  %v2909_v38 = vld [vmem:[#allocation7 + $0x2cc] ss:$16 sps:$4 sm:$0xff]  }
 0x1d8   :  { %2124 = vmatpush1.bf16.msra.mxu0 %v2817_v39  ;;  %v2907_v39 = vld [vmem:[#allocation7 + $0x2c8] ss:$16 sps:$4 sm:$0xff]  }
 0x1d9   :  { %2125 = vmatprep.subr.bf16.mxu0 %v2825_v40  ;;  %v2912_v40 = vld [vmem:[#allocation7 + $0x2ac] ss:$16 sps:$4 sm:$0xff]  }
 0x1dc   :  { %2126 = vmatpush1.bf16.msra.mxu0 %v2823_v41  ;;  %v2910_v41 = vld [vmem:[#allocation7 + $0x2a8] ss:$16 sps:$4 sm:$0xff]  }
 0x1dd   :  { %2127 = vmatprep.subr.bf16.mxu0 %v2831_v42  ;;  %v2915_v42 = vld [vmem:[#allocation7 + $0x28c] ss:$16 sps:$4 sm:$0xff]  }
 0x1e0   :  { %2128 = vmatpush1.bf16.msra.mxu0 %v2829_v43  ;;  %v2913_v43 = vld [vmem:[#allocation7 + $0x288] ss:$16 sps:$4 sm:$0xff]  }
 0x1e1   :  { %2129 = vmatprep.subr.bf16.mxu0 %v2837_v44  ;;  %v2918_v44 = vld [vmem:[#allocation7 + $0x26c] ss:$16 sps:$4 sm:$0xff]  }
 0x1e4   :  { %2130 = vmatpush1.bf16.msra.mxu0 %v2835_v45  ;;  %v2916_v45 = vld [vmem:[#allocation7 + $0x268] ss:$16 sps:$4 sm:$0xff]  }
 0x1e5   :  { %2131 = vmatprep.subr.bf16.mxu0 %v2843_v46  ;;  %v2921_v46 = vld [vmem:[#allocation7 + $0x24c] ss:$16 sps:$4 sm:$0xff]  }
 0x1e8   :  { %2132 = vmatpush1.bf16.msra.mxu0 %v2841_v47  ;;  %v2919_v47 = vld [vmem:[#allocation7 + $0x248] ss:$16 sps:$4 sm:$0xff]  }
 0x1e9   :  { %2133 = vmatprep.subr.bf16.mxu0 %v2849_v48  ;;  %v2922_v48 = vld [vmem:[#allocation7 + $0x228] ss:$16 sps:$4 sm:$0xff]  }
 0x1ec   :  { %2134 = vmatpush1.bf16.msra.mxu0 %v2847_v49  ;;  %v2927_v49 = vld [vmem:[#allocation7 + $0x20c] ss:$16 sps:$4 sm:$0xff]  }
 0x1ed   :  { %2135 = vmatprep.subr.bf16.mxu0 %v2855_v50  ;;  %v2925_v50 = vld [vmem:[#allocation7 + $0x208] ss:$16 sps:$4 sm:$0xff]  }
 0x1f0   :  { %2136 = vmatpush1.bf16.msra.mxu0 %v2853_v51  ;;  %v2930_v51 = vld [vmem:[#allocation7 + $0x3ec] ss:$16 sps:$4 sm:$0xff]  }
 0x1f1   :  { %2137 = vmatprep.subr.bf16.mxu0 %v2861_v52  ;;  %v2928_v52 = vld [vmem:[#allocation7 + $0x3e8] ss:$16 sps:$4 sm:$0xff]  }
 0x1f4   :  { %2138 = vmatpush2.bf16.msra.mxu0 %v2859_v53  ;;  %v2933_v53 = vld [vmem:[#allocation7 + $0x3cc] ss:$16 sps:$4 sm:$0xff]  }
 0x1f5   :  { %2139 = vmatprep.subr.bf16.mxu0 %v2867_v54  ;;  %v2931_v54 = vld [vmem:[#allocation7 + $0x3c8] ss:$16 sps:$4 sm:$0xff]  }
 0x1f8   :  { %2140 = vmatpush2.bf16.msra.mxu0 %v2865_v55  ;;  %v2936_v55 = vld [vmem:[#allocation7 + $0x3ac] ss:$16 sps:$4 sm:$0xff]  }
 0x1f9   :  { %2141 = vmatprep.subr.bf16.mxu0 %v2873_v56  ;;  %v2934_v56 = vld [vmem:[#allocation7 + $0x3a8] ss:$16 sps:$4 sm:$0xff]  }
 0x1fc   :  { %2142 = vmatpush2.bf16.msra.mxu0 %v2871_v57  ;;  %v2939_v57 = vld [vmem:[#allocation7 + $0x38c] ss:$16 sps:$4 sm:$0xff]  }
 0x1fd   :  { %2143 = vmatprep.subr.bf16.mxu0 %v2879_v58  ;;  %v2937_v58 = vld [vmem:[#allocation7 + $0x388] ss:$16 sps:$4 sm:$0xff]  }
 0x200   :  { %2144 = vmatpush2.bf16.msra.mxu0 %v2877_v59  ;;  %v2942_v59 = vld [vmem:[#allocation7 + $0x36c] ss:$16 sps:$4 sm:$0xff]  }
 0x201   :  { %v1173_v2 = vpop.f32.mrf.mxu0  ;;  %v1216_v3 = vpop.f32.mrf.mxu1  ;;  %2145 = vmatprep.subr.bf16.mxu0 %v2885_v62  ;;  %v2940_v62 = vld [vmem:[#allocation7 + $0x368] ss:$16 sps:$4 sm:$0xff]  }
 0x202   :  { %v1174_v5 = vadd.f32 %v1173_v2, %v404_v63  ;;  %v2946_v2 = vld [vmem:[#allocation7 + $0x328] ss:$16 sps:$4 sm:$0xff]  }
 0x203   :  { %v1175_v7 = vpop.f32.mrf.mxu0  ;;  %v1218_v8 = vpop.f32.mrf.mxu1 }
 0x204   :  { %v1176_v9 = vadd.f32 %v1175_v7, %v408_v0  ;;  %2146 = vmatpush2.bf16.msra.mxu0 %v2883_v1  ;;  %v1217_v14 = vadd.f32 %v1216_v3, %v1174_v5  ;;  %v2948_v1 = vld [vmem:[#allocation7 + $0x32c] ss:$16 sps:$4 sm:$0xff]  }
 0x205   :  { %v1177_v11 = vpop.f32.mrf.mxu0  ;;  %v1220_v60 = vpop.f32.mrf.mxu1  ;;  %2147 = vmatprep.subr.bf16.mxu0 %v2891_v4  ;;  %v2951_v3 = vld [vmem:[#allocation7 + $0x30c] ss:$16 sps:$4 sm:$0xff]   ;;  %v2949_v4 = vld [vmem:[#allocation7 + $0x308] ss:$16 sps:$4 sm:$0xff]  }
 0x206   :  { %v1219_v12 = vadd.f32 %v1218_v8, %v1176_v9  ;;  %v1178_v13 = vadd.f32 %v1177_v11, %v404_v63  ;;  %v1227_v27 = vmul.f32 0.01, %v1217_v14  ;;  %v2945_v63 = vld [vmem:[#allocation7 + $0x34c] ss:$16 sps:$4 sm:$0xff]  }
 0x207   :  { %v1179_v16 = vpop.f32.mrf.mxu0  ;;  %v1222_v22 = vpop.f32.mrf.mxu1  ;;  %v1373_v9 = vld [vmem:[%s3157_s6] sm:$0xf] }
 0x208   :  { %v1221_v6 = vadd.f32 %v1220_v60, %v1178_v13  ;;  %v1180_v20 = vadd.f32 %v1179_v16, %v408_v0  ;;  %2148 = vmatpush2.bf16.msra.mxu0 %v2889_v10  ;;  %v1228_v24 = vmul.f32 0.01, %v1219_v12  ;;  %v1235_v33 = vmax.f32 %v1217_v14, %v1227_v27  ;;  %v2943_v0 = vld [vmem:[#allocation7 + $0x348] ss:$16 sps:$4 sm:$0xff]  }
 0x209   :  { %2149 = vmatprep.subr.bf16.mxu0 %v2897_v61  ;;  %v1382_v11 = vrot.slane %v1373_v9, %v3092_v17  ;;  %v1378_v61 = vrot.slane %v1373_v9, %v3087_v15 }
 0x20a   :  { %v1231_v25 = vmul.f32 0.01, %v1221_v6  ;;  %v1223_v26 = vadd.f32 %v1222_v22, %v1180_v20  ;;  %v1236_v31 = vmax.f32 %v1219_v12, %v1228_v24 }
 0x20c   :  { %v1232_v28 = vmul.f32 0.01, %v1223_v26  ;;  %2150 = vmatpush2.bf16.msra.mxu0 %v2895_v21  ;;  %v1239_v30 = vmax.f32 %v1221_v6, %v1231_v25 }
 0x20d   :  { %2151 = vmatprep.subr.bf16.mxu0 %v2903_v23 }
 0x20e   :  { %v1240_v32 = vmax.f32 %v1223_v26, %v1232_v28  ;;  %v3126_v36 = vpack.c.bf16 %v1239_v30, %v1235_v33  ;;  %v1386_v28 = vrot.slane %v1373_v9, %v3096_v19 }
 0x210   :  { %2152 = vmatpush2.bf16.msra.mxu0 %v2901_v29  ;;  %v1244_v34 = vpack.c.bf16 %v1240_v32, %v1236_v31  ;;  %v2223_v31 = vld [vmem:[%s3158_s7] sm:$0xf]  ;;  %v1390_v32 = vrot.slane %v1373_v9, %v3094_v18 }
 0x212   :  { %2110 = vmatprep.mubr.bf16.mxu1 %v1244_v34 }
 0x213   :  { %2111 = vmatmul.mubr.bf16.vlgmr.msra.gmra.mxu1 %v3126_v36  ;;  %2154 = vmatmul.mubr.bf16.vlgmr.msra.gmra.mxu0 %v3119_v37  ;;  %v2924_v37 = vld [vmem:[#allocation7 + $0x22c] ss:$16 sps:$4 sm:$0xff]  }
 0x214   :  { %2165 = vmatpush1.bf16.msra.mxu1 %v2904_v35  ;;  %2196 = vmatprep.mubr.bf16.mxu1 %v1244_v34  ;;  %v2232_v34 = vrot.slane %v2223_v31, %v3092_v17 }
 0x215   :  { %2166 = vmatprep.subr.bf16.mxu1 %v2909_v38 }
 0x218   :  { %2167 = vmatpush1.bf16.msra.mxu1 %v2907_v39 }
 0x219   :  { %2168 = vmatprep.subr.bf16.mxu1 %v2912_v40  ;;  %v2228_v40 = vrot.slane %v2223_v31, %v3087_v15 }
 0x21c   :  { %2169 = vmatpush1.bf16.msra.mxu1 %v2910_v41 }
 0x21d   :  { %2170 = vmatprep.subr.bf16.mxu1 %v2915_v42 }
 0x220   :  { %2171 = vmatpush1.bf16.msra.mxu1 %v2913_v43 }
 0x221   :  { %2172 = vmatprep.subr.bf16.mxu1 %v2918_v44 }
 0x224   :  { %2173 = vmatpush1.bf16.msra.mxu1 %v2916_v45 }
 0x225   :  { %2174 = vmatprep.subr.bf16.mxu1 %v2921_v46 }
 0x228   :  { %2175 = vmatpush1.bf16.msra.mxu1 %v2919_v47 }
 0x229   :  { %2176 = vmatprep.subr.bf16.mxu1 %v2924_v37 }
 0x22c   :  { %2177 = vmatpush1.bf16.msra.mxu1 %v2922_v48 }
 0x22d   :  { %2178 = vmatprep.subr.bf16.mxu1 %v2927_v49 }
 0x230   :  { %2179 = vmatpush1.bf16.msra.mxu1 %v2925_v50 }
 0x231   :  { %2180 = vmatprep.subr.bf16.mxu1 %v2930_v51  ;;  %v2236_v51 = vrot.slane %v2223_v31, %v3096_v19 }
 0x234   :  { %2181 = vmatpush2.bf16.msra.mxu1 %v2928_v52 }
 0x235   :  { %2182 = vmatprep.subr.bf16.mxu1 %v2933_v53 }
 0x238   :  { %2183 = vmatpush2.bf16.msra.mxu1 %v2931_v54  ;;  %v2240_v54 = vrot.slane %v2223_v31, %v3094_v18 }
 0x239   :  { %2184 = vmatprep.subr.bf16.mxu1 %v2936_v55 }
 0x23c   :  { %2185 = vmatpush2.bf16.msra.mxu1 %v2934_v56 }
 0x23d   :  { %2186 = vmatprep.subr.bf16.mxu1 %v2939_v57 }
 0x240   :  { %2187 = vmatpush2.bf16.msra.mxu1 %v2937_v58 }
 0x241   :  { %2188 = vmatprep.subr.bf16.mxu1 %v2942_v59 }
 0x244   :  { %2189 = vmatpush2.bf16.msra.mxu1 %v2940_v62 }
 0x245   :  { %2190 = vmatprep.subr.bf16.mxu1 %v2945_v63 }
 0x248   :  { %2191 = vmatpush2.bf16.msra.mxu1 %v2943_v0 }
 0x249   :  { %2192 = vmatprep.subr.bf16.mxu1 %v2948_v1 }
 0x24c   :  { %2193 = vmatpush2.bf16.msra.mxu1 %v2946_v2 }
 0x24d   :  { %2194 = vmatprep.subr.bf16.mxu1 %v2951_v3 }
 0x250   :  { %2195 = vmatpush2.bf16.msra.mxu1 %v2949_v4 }
 0x253   :  { %2197 = vmatmul.mubr.bf16.vlgmr.msra.gmra.mxu1 %v3126_v36 }
 0x293   :  { %v2069_v5 = vpop.f32.mrf.mxu0 }
 0x294   :  { %v2070_v16 = vadd.f32 %v2069_v5, %v1378_v61 }
 0x295   :  { %v2071_v8 = vpop.f32.mrf.mxu0 }
 0x296   :  { %v2072_v13 = vadd.f32 %v2071_v8, %v1382_v11 }
 0x297   :  { %v2073_v60 = vpop.f32.mrf.mxu0 }
 0x298   :  { %v2074_v24 = vadd.f32 %v2073_v60, %v1378_v61 }
 0x299   :  { %v2075_v14 = vpop.f32.mrf.mxu0 }
 0x29a   :  { %v2076_v22 = vadd.f32 %v2075_v14, %v1382_v11 }
 0x2d3   :  { %v2112_v7 = vpop.f32.mrf.mxu1  ;;  %v2155_v6 = vpop.f32.mrf.mxu0 }
 0x2d4   :  { %v2113_v23 = vadd.f32 %v2112_v7, %v2070_v16  ;;  %v2156_v38 = vadd.f32 %v2155_v6, %v1386_v28 }
 0x2d5   :  { %v2114_v10 = vpop.f32.mrf.mxu1  ;;  %v2157_v26 = vpop.f32.mrf.mxu0 }
 0x2d6   :  { %v2115_v20 = vadd.f32 %v2114_v10, %v2072_v13  ;;  %v2207_v29 = vmul.f32 0.01, %v2113_v23  ;;  %v2158_v43 = vadd.f32 %v2157_v26, %v1390_v32 }
 0x2d7   :  { %v2116_v12 = vpop.f32.mrf.mxu1  ;;  %v2159_v35 = vpop.f32.mrf.mxu0 }
 0x2d8   :  { %v2208_v25 = vmul.f32 0.01, %v2115_v20  ;;  %v2117_v30 = vadd.f32 %v2116_v12, %v2074_v24  ;;  %v2215_v39 = vmax.f32 %v2113_v23, %v2207_v29  ;;  %v2160_v48 = vadd.f32 %v2159_v35, %v1386_v28  ;;  %v2548_v12 = vld [vmem:[#allocation2] ss:$0 sm:$0xff] }
 0x2d9   :  { %v2118_v21 = vpop.f32.mrf.mxu1  ;;  %v2161_v47 = vpop.f32.mrf.mxu0 }
 0x2da   :  { %v2119_v27 = vadd.f32 %v2118_v21, %v2076_v22  ;;  %v2216_v33 = vmax.f32 %v2115_v20, %v2208_v25  ;;  %v2211_v41 = vmul.f32 0.01, %v2117_v30  ;;  %v2245_v17 = vmul.f32 %v2228_v40, %v2215_v39 }
 0x2db   :  { %v2162_v55 = vadd.f32 %v2161_v47, %v1390_v32 }
 0x2dc   :  { %v2212_v36 = vmul.f32 0.01, %v2119_v27  ;;  %v2246_v45 = vmul.f32 %v2232_v34, %v2216_v33  ;;  %v2219_v52 = vmax.f32 %v2117_v30, %v2211_v41 }
 0x2de   :  { %v2220_v46 = vmax.f32 %v2119_v27, %v2212_v36  ;;  %v2253_v62 = vadd.f32 %v2246_v45, %v2245_v17  ;;  %v2249_v3 = vmul.f32 %v2228_v40, %v2219_v52 }
 0x2e0   :  { %v2250_v58 = vmul.f32 %v2232_v34, %v2220_v46 }
 0x2e2   :  { %v2258_v18 = vadd.f32 %v2250_v58, %v2249_v3 }
 0x313   :  { %v2198_v42 = vpop.f32.mrf.mxu1 }
 0x314   :  { %v2199_v44 = vadd.f32 %v2198_v42, %v2156_v38 }
 0x315   :  { %v2200_v37 = vpop.f32.mrf.mxu1 }
 0x316   :  { %v2209_v49 = vmul.f32 0.01, %v2199_v44  ;;  %v2201_v50 = vadd.f32 %v2200_v37, %v2158_v43 }
 0x317   :  { %v2202_v53 = vpop.f32.mrf.mxu1 }
 0x318   :  { %v2217_v15 = vmax.f32 %v2199_v44, %v2209_v49  ;;  %v2210_v56 = vmul.f32 0.01, %v2201_v50  ;;  %v2203_v57 = vadd.f32 %v2202_v53, %v2160_v48 }
 0x319   :  { %v2204_v59 = vpop.f32.mrf.mxu1 }
 0x31a   :  { %v2218_v63 = vmax.f32 %v2201_v50, %v2210_v56  ;;  %v2213_v0 = vmul.f32 0.01, %v2203_v57  ;;  %v2205_v1 = vadd.f32 %v2204_v59, %v2162_v55  ;;  %v2247_v2 = vmul.f32 %v2236_v51, %v2217_v15 }
 0x31c   :  { %v2221_v4 = vmax.f32 %v2203_v57, %v2213_v0  ;;  %v2214_v5 = vmul.f32 0.01, %v2205_v1  ;;  %v2248_v19 = vmul.f32 %v2240_v54, %v2218_v63  ;;  %v2254_v7 = vadd.f32 %v2253_v62, %v2247_v2 }
 0x31e   :  { %v2251_v8 = vmul.f32 %v2236_v51, %v2221_v4  ;;  %v2222_v9 = vmax.f32 %v2205_v1, %v2214_v5  ;;  %v2255_v10 = vadd.f32 %v2254_v7, %v2248_v19 }
 0x320   :  { %2256 = vadd.xlane.f32.xlu0 %v2255_v10  ;;  %v2252_v11 = vmul.f32 %v2240_v54, %v2222_v9  ;;  %v2259_v60 = vadd.f32 %v2258_v18, %v2251_v8 }
 0x322   :  { %v2260_v61 = vadd.f32 %v2259_v60, %v2252_v11 }
 0x324   :  { %2261 = vadd.xlane.f32.xlu0 %v2260_v61 }
 0x3a9   :  { %v2257_v13 = vpop.xlane.xlu0 %2256 }
 0x3aa   :  { %v2270_v14 = vadd.f32 %v2548_v12, %v2257_v13 }
 0x3ac   :  { %2273 = vst.msk [vmem:[%s3160_s9] sm:$0xff] %vm2272_vm1, %v2270_v14 }
 0x3ad   :  { %v2262_v16 = vpop.xlane.xlu0 %2261 }
 0x3ae   :  { %v2271_v6 = vadd.f32 %v2548_v12, %v2262_v16 }
 0x3b0   :  { %2274 = vst.msk [vmem:[%s3160_s9 + $0x8] sm:$0xff] %vm2272_vm1, %v2271_v6 }
 0x3b1   :  { %2279 = vsyncpa [#allocation4], 1 }
 0x3b2   :  { %2280 = vsyncpa [#allocation6], 1 }

</bundles_post_ra>
